<compile_context>
chip_gen: v6e
topology: v6e:2x2x1
jax: 0.10.0
libtpu: 0.0.40
codegen_flags: <defaults>
</compile_context>

<pallas_src>
import math
import functools

import jax
import jax.numpy as jnp
import numpy as np
from jax.experimental import pallas as pl
from jax.experimental.pallas import tpu as pltpu

LN_EPS = 1e-5  # PyTorch nn.LayerNorm default


def _layernorm(x, gamma, beta):
    mu = jnp.mean(x, axis=-1, keepdims=True)
    var = jnp.mean((x - mu) ** 2, axis=-1, keepdims=True)
    return (x - mu) * jax.lax.rsqrt(var + LN_EPS) * gamma + beta


def _cross_attn_kernel(
    q_ref, k_ref,
    wq_ref, bq_ref, wkv_ref, bkv_ref,
    gpre_ref, bpre_ref, gpost_ref, bpost_ref,
    out_ref,
    attn_ref,
    *, num_heads, head_dim, tb, lq, lk, d_model,
):
    D = d_model

    # [TB, L, D] -> [TB*L, D] (trivial major-dim merge, no relayout)
    q = q_ref[...].reshape(tb * lq, D).astype(jnp.float32)
    k_b = k_ref[...].reshape(tb * lk, D).astype(jnp.bfloat16)

    gpre, bpre = gpre_ref[...], bpre_ref[...]      # [1, D] f32
    gpost, bpost = gpost_ref[...], bpost_ref[...]  # [1, D] f32

    # pre_norm(query) in f32 (VPU).
    qn = _layernorm(q, gpre, bpre)                 # [TB*Lq, D] f32

    # Projections: bf16 operands on the MXU, f32 accumulation.
    # Wq / bq already carry the 1/sqrt(head_dim) attention scale (folded on host).
    Q = jnp.dot(qn.astype(jnp.bfloat16), wq_ref[...],
                preferred_element_type=jnp.float32) + bq_ref[...]        # [TB*Lq, D]
    KV = jnp.dot(k_b, wkv_ref[...],
                 preferred_element_type=jnp.float32) + bkv_ref[...]      # [TB*Lk, 2D]

    Qb = Q.astype(jnp.bfloat16)
    KVb = KV.astype(jnp.bfloat16)

    contract_last = (((1,), (1,)), ((), ()))  # Q[l,d] x K[l,d] -> S[lq,lk], no .T

    # Static unroll over (batch-in-block, head); each head's output goes straight
    # into the f32 VMEM scratch at its lane offset (no concatenate epilogue).
    for b in range(tb):
        qr = slice(b * lq, (b + 1) * lq)
        kr = slice(b * lk, (b + 1) * lk)
        for h in range(num_heads):
            hl = slice(h * head_dim, (h + 1) * head_dim)
            vl = slice(D + h * head_dim, D + (h + 1) * head_dim)
            Qh = Qb[qr, hl]                         # [Lq, Dh] bf16 (pre-scaled)
            Kh = KVb[kr, hl]                        # [Lk, Dh] bf16
            Vh = KVb[kr, vl]                        # [Lk, Dh] bf16

            S = jax.lax.dot_general(Qh, Kh, contract_last,
                                    preferred_element_type=jnp.float32)  # [Lq, Lk]
            S = S - jnp.max(S, axis=-1, keepdims=True)
            P = jnp.exp(S)
            P = P * pl.reciprocal(jnp.sum(P, axis=-1, keepdims=True), approx=True)
            Oh = jnp.dot(P.astype(jnp.bfloat16), Vh,
                         preferred_element_type=jnp.float32)             # [Lq, Dh]
            attn_ref[qr, hl] = Oh

    # residual (dropout = identity in eval) + post_norm, all in f32.
    out = _layernorm(qn + attn_ref[...], gpost, bpost)
    out_ref[...] = out.reshape(tb, lq, D).astype(out_ref.dtype)


def cross_attention_block(query, key, params, *, num_heads, batch_block=None):
    B, Lq, D = query.shape
    _, Lk, _ = key.shape
    assert D % num_heads == 0
    head_dim = D // num_heads
    scale = 1.0 / math.sqrt(head_dim)

    f32 = jnp.float32

    # --- Host-side weight preparation ------------------------------------------
    # Fold attention scale into the Q projection.
    wq = params["wq"].astype(f32) * scale
    bq = params["bq"].astype(f32) * scale
    # Fold v_proj into the MHA value projection:  V = k @ (Wvp@Wv) + (bvp@Wv + bv).
    wv_fused = params["wvp"].astype(f32) @ params["wv"].astype(f32)
    bv_fused = params["bvp"].astype(f32) @ params["wv"].astype(f32) + params["bv"].astype(f32)
    # One wide K|V weight so key is projected with a single [D, 2D] matmul.
    wkv = jnp.concatenate([params["wk"].astype(f32), wv_fused], axis=1)   # [D, 2D]
    bkv = jnp.concatenate([params["bk"].astype(f32), bv_fused], axis=1)   # [1, 2D]

    wq_b = wq.astype(jnp.bfloat16)
    wkv_b = wkv.astype(jnp.bfloat16)

    g_pre = params["g_pre"].astype(f32)
    b_pre = params["b_pre"].astype(f32)
    g_post = params["g_post"].astype(f32)
    b_post = params["b_post"].astype(f32)

    # --- Batch blocking ----------------------------------------------------------
    # Target ~256 projection rows per grid step, but keep >= 2 grid steps when
    # possible so both TensorCores on v7x get work (v5e/v6e: single TC, no harm).
    if batch_block is None:
        tb = max(1, min(B, 256 // max(Lq, 1)))
        while tb > 1 and pl.cdiv(B, tb) < 2:
            tb //= 2
    else:
        tb = batch_block
    grid_b = pl.cdiv(B, tb)

    # --- VMEM budget (weights are grid-invariant and bf16; blocks double-buffered)
    in_bytes = query.dtype.itemsize
    k_bytes = key.dtype.itemsize
    vmem_est = (
        2 * tb * Lq * D * in_bytes          # query blocks
        + 2 * tb * Lk * D * k_bytes         # key blocks
        + 2 * tb * Lq * D * in_bytes        # output blocks
        + 2 * (D * D + D * 2 * D) * 2       # bf16 Wq + Wkv (double-buffered)
        + 2 * 7 * D * 4                     # biases + LN params
        + tb * Lq * D * 4                   # attention scratch
        + (tb * Lq * D + tb * Lk * 2 * D) * 4 * 4  # live f32/bf16 temporaries, margin
    )
    vmem_limit = int(min(max(2 * vmem_est, 8 * 1024 * 1024), 64 * 1024 * 1024))

    kernel = functools.partial(
        _cross_attn_kernel,
        num_heads=num_heads, head_dim=head_dim,
        tb=tb, lq=Lq, lk=Lk, d_model=D,
    )

    full = lambda shape: pl.BlockSpec(shape, lambda b: (0,) * len(shape))

    grid_spec = pltpu.PrefetchScalarGridSpec(
        num_scalar_prefetch=0,
        grid=(grid_b,),
        in_specs=[
            pl.BlockSpec((tb, Lq, D), lambda b: (b, 0, 0)),   # query
            pl.BlockSpec((tb, Lk, D), lambda b: (b, 0, 0)),   # key
            full((D, D)), full((1, D)),                       # Wq (bf16), bq (f32)
            full((D, 2 * D)), full((1, 2 * D)),               # Wkv (bf16), bkv (f32)
            full((1, D)), full((1, D)),                       # pre_norm gamma, beta
            full((1, D)), full((1, D)),                       # post_norm gamma, beta
        ],
        out_specs=pl.BlockSpec((tb, Lq, D), lambda b: (b, 0, 0)),
        scratch_shapes=[pltpu.VMEM((tb * Lq, D), jnp.float32)],
    )

    return pl.pallas_call(
        kernel,
        out_shape=jax.ShapeDtypeStruct((B, Lq, D), query.dtype),
        grid_spec=grid_spec,
        compiler_params=pltpu.CompilerParams(
            dimension_semantics=("parallel",),
            vmem_limit_bytes=vmem_limit,
        ),
    )(
        query, key,
        wq_b, bq,
        wkv_b, bkv,
        g_pre, b_pre,
        g_post, b_post,
    )


def reference_jax(query, key, params, *, num_heads):
    """Pure-JAX f32 mirror of the PyTorch forward (eval mode)."""
    B, Lq, D = query.shape
    Lk = key.shape[1]
    Dh = D // num_heads
    q32 = query.astype(jnp.float32)
    k32 = key.astype(jnp.float32)

    qn = _layernorm(q32, params["g_pre"][0], params["b_pre"][0])
    v_in = k32 @ params["wvp"] + params["bvp"][0]
    Q = qn @ params["wq"] + params["bq"][0]
    K = k32 @ params["wk"] + params["bk"][0]
    V = v_in @ params["wv"] + params["bv"][0]

    def split(x, L):
        return x.reshape(B, L, num_heads, Dh).transpose(0, 2, 1, 3)

    Qh, Kh, Vh = split(Q, Lq), split(K, Lk), split(V, Lk)
    S = jnp.einsum("bhqd,bhkd->bhqk", Qh, Kh) / math.sqrt(Dh)
    P = jax.nn.softmax(S, axis=-1)
    O = jnp.einsum("bhqk,bhkd->bhqd", P, Vh)
    attn = O.transpose(0, 2, 1, 3).reshape(B, Lq, D)
    return _layernorm(qn + attn, params["g_post"][0], params["b_post"][0])


def init_params(key, d_model):
    ks = jax.random.split(key, 8)
    std = 0.02
    mk = lambda k: (std * jax.random.normal(k, (d_model, d_model), jnp.float32))
    bv = lambda k: (std * jax.random.normal(k, (1, d_model), jnp.float32))
    return {
        "wq": mk(ks[0]), "bq": bv(ks[4]),
        "wk": mk(ks[1]), "bk": bv(ks[5]),
        "wv": mk(ks[2]), "bv": bv(ks[6]),
        "wvp": mk(ks[3]), "bvp": bv(ks[7]),
        "g_pre": jnp.ones((1, d_model), jnp.float32),
        "b_pre": jnp.zeros((1, d_model), jnp.float32),
        "g_post": jnp.ones((1, d_model), jnp.float32),
        "b_post": jnp.zeros((1, d_model), jnp.float32),
    }


if __name__ == "__main__":
    # Small but lane/sublane-friendly shapes: D multiple of 128, L multiples of 8.
    B, Lq, Lk, D, H = 4, 16, 32, 128, 4

    root = jax.random.PRNGKey(0)
    kq, kk, kp = jax.random.split(root, 3)
    query = jax.random.normal(kq, (B, Lq, D), jnp.float32)
    key_t = jax.random.normal(kk, (B, Lk, D), jnp.float32)
    params = init_params(kp, D)

    out = cross_attention_block(query, key_t, params, num_heads=H)
    out = jax.block_until_ready(out)

    ref = reference_jax(query, key_t, params, num_heads=H)
    # bf16 MXU operands + approx reciprocal in the kernel vs. f32 reference.
    np.testing.assert_allclose(np.asarray(out), np.asarray(ref), rtol=3e-2, atol=3e-2)

    print("KERNEL_OK")
</pallas_src>

<mosaic_0001>
module attributes {stable_mosaic.version = 11 : i64} {
  func.func @_cross_attn_kernel(%arg0: i32, %arg1: memref<2x16x128xf32, #tpu.memory_space<vmem>>, %arg2: memref<2x32x128xf32, #tpu.memory_space<vmem>>, %arg3: memref<128x128xbf16, #tpu.memory_space<vmem>>, %arg4: memref<1x128xf32, #tpu.memory_space<vmem>>, %arg5: memref<128x256xbf16, #tpu.memory_space<vmem>>, %arg6: memref<1x256xf32, #tpu.memory_space<vmem>>, %arg7: memref<1x128xf32, #tpu.memory_space<vmem>>, %arg8: memref<1x128xf32, #tpu.memory_space<vmem>>, %arg9: memref<1x128xf32, #tpu.memory_space<vmem>>, %arg10: memref<1x128xf32, #tpu.memory_space<vmem>>, %arg11: memref<2x16x128xf32, #tpu.memory_space<vmem>>, %arg12: memref<32x128xf32, #tpu.memory_space<vmem>>) attributes {dimension_semantics = [#tpu.dimension_semantics<parallel>], iteration_bounds = array<i64: 2>, scalar_prefetch = 0 : i64, scratch_operands = 1 : i64, tpu.core_type = #tpu.core_type<tc>, window_params = [{transform_indices = @transform_0, window_bounds = array<i64: 2, 16, 128>}, {transform_indices = @transform_1, window_bounds = array<i64: 2, 32, 128>}, {pipeline_mode = #tpu.pipeline_mode<synchronous>, transform_indices = @transform_2, window_bounds = array<i64: 128, 128>}, {pipeline_mode = #tpu.pipeline_mode<synchronous>, transform_indices = @transform_3, window_bounds = array<i64: 1, 128>}, {pipeline_mode = #tpu.pipeline_mode<synchronous>, transform_indices = @transform_4, window_bounds = array<i64: 128, 256>}, {pipeline_mode = #tpu.pipeline_mode<synchronous>, transform_indices = @transform_5, window_bounds = array<i64: 1, 256>}, {pipeline_mode = #tpu.pipeline_mode<synchronous>, transform_indices = @transform_6, window_bounds = array<i64: 1, 128>}, {pipeline_mode = #tpu.pipeline_mode<synchronous>, transform_indices = @transform_7, window_bounds = array<i64: 1, 128>}, {pipeline_mode = #tpu.pipeline_mode<synchronous>, transform_indices = @transform_8, window_bounds = array<i64: 1, 128>}, {pipeline_mode = #tpu.pipeline_mode<synchronous>, transform_indices = @transform_9, window_bounds = array<i64: 1, 128>}, {transform_indices = @transform_10, window_bounds = array<i64: 2, 16, 128>}]} {
    %c0 = arith.constant 0 : index
    %c0_0 = arith.constant 0 : index
    %c0_1 = arith.constant 0 : index
    %0 = vector.load %arg1[%c0, %c0_0, %c0_1] : memref<2x16x128xf32, #tpu.memory_space<vmem>>, vector<2x16x128xf32>
    %1 = vector.shape_cast %0 : vector<2x16x128xf32> to vector<32x128xf32>
    %c0_2 = arith.constant 0 : index
    %c0_3 = arith.constant 0 : index
    %c0_4 = arith.constant 0 : index
    %2 = vector.load %arg2[%c0_2, %c0_3, %c0_4] : memref<2x32x128xf32, #tpu.memory_space<vmem>>, vector<2x32x128xf32>
    %3 = vector.shape_cast %2 : vector<2x32x128xf32> to vector<64x128xf32>
    %4 = arith.truncf %3 : vector<64x128xf32> to vector<64x128xbf16>
    %c0_5 = arith.constant 0 : index
    %c0_6 = arith.constant 0 : index
    %5 = vector.load %arg7[%c0_5, %c0_6] : memref<1x128xf32, #tpu.memory_space<vmem>>, vector<1x128xf32>
    %c0_7 = arith.constant 0 : index
    %c0_8 = arith.constant 0 : index
    %6 = vector.load %arg8[%c0_7, %c0_8] : memref<1x128xf32, #tpu.memory_space<vmem>>, vector<1x128xf32>
    %c0_9 = arith.constant 0 : index
    %c0_10 = arith.constant 0 : index
    %7 = vector.load %arg9[%c0_9, %c0_10] : memref<1x128xf32, #tpu.memory_space<vmem>>, vector<1x128xf32>
    %c0_11 = arith.constant 0 : index
    %c0_12 = arith.constant 0 : index
    %8 = vector.load %arg10[%c0_11, %c0_12] : memref<1x128xf32, #tpu.memory_space<vmem>>, vector<1x128xf32>
    %cst = arith.constant dense<0.000000e+00> : vector<32xf32>
    %9 = vector.multi_reduction <add>, %1, %cst [1] : vector<32x128xf32> to vector<32xf32>
    %10 = vector.shape_cast %9 : vector<32xf32> to vector<32x1xf32>
    %cst_13 = arith.constant 1.280000e+02 : f32
    %11 = vector.broadcast %cst_13 : f32 to vector<32x1xf32>
    %12 = arith.divf %10, %11 : vector<32x1xf32>
    %13 = vector.broadcast %12 : vector<32x1xf32> to vector<32x128xf32>
    %14 = arith.subf %1, %13 : vector<32x128xf32>
    %15 = arith.mulf %14, %14 : vector<32x128xf32>
    %cst_14 = arith.constant dense<0.000000e+00> : vector<32xf32>
    %16 = vector.multi_reduction <add>, %15, %cst_14 [1] : vector<32x128xf32> to vector<32xf32>
    %17 = vector.shape_cast %16 : vector<32xf32> to vector<32x1xf32>
    %cst_15 = arith.constant 1.280000e+02 : f32
    %18 = vector.broadcast %cst_15 : f32 to vector<32x1xf32>
    %19 = arith.divf %17, %18 : vector<32x1xf32>
    %20 = vector.broadcast %12 : vector<32x1xf32> to vector<32x128xf32>
    %21 = arith.subf %1, %20 : vector<32x128xf32>
    %cst_16 = arith.constant 9.99999974E-6 : f32
    %22 = vector.broadcast %cst_16 : f32 to vector<32x1xf32>
    %23 = arith.addf %19, %22 : vector<32x1xf32>
    %24 = math.rsqrt %23 : vector<32x1xf32>
    %25 = vector.broadcast %24 : vector<32x1xf32> to vector<32x128xf32>
    %26 = arith.mulf %21, %25 : vector<32x128xf32>
    %27 = vector.broadcast %5 : vector<1x128xf32> to vector<32x128xf32>
    %28 = arith.mulf %26, %27 : vector<32x128xf32>
    %29 = vector.broadcast %6 : vector<1x128xf32> to vector<32x128xf32>
    %30 = arith.addf %28, %29 : vector<32x128xf32>
    %31 = arith.truncf %30 : vector<32x128xf32> to vector<32x128xbf16>
    %c0_17 = arith.constant 0 : index
    %c0_18 = arith.constant 0 : index
    %32 = vector.load %arg3[%c0_17, %c0_18] : memref<128x128xbf16, #tpu.memory_space<vmem>>, vector<128x128xbf16>
    %cst_19 = arith.constant dense<0.000000e+00> : vector<32x128xf32>
    %33 = tpu.matmul %31, %32, %cst_19 {dimension_numbers = #tpu.dot_dimension_numbers<[1], [0], [0], [1], [0, 0, 1, 1], [], []>} : vector<32x128xbf16>, vector<128x128xbf16>, vector<32x128xf32> -> vector<32x128xf32>
    %c0_20 = arith.constant 0 : index
    %c0_21 = arith.constant 0 : index
    %34 = vector.load %arg4[%c0_20, %c0_21] : memref<1x128xf32, #tpu.memory_space<vmem>>, vector<1x128xf32>
    %35 = vector.broadcast %34 : vector<1x128xf32> to vector<32x128xf32>
    %36 = arith.addf %33, %35 : vector<32x128xf32>
    %c0_22 = arith.constant 0 : index
    %c0_23 = arith.constant 0 : index
    %37 = vector.load %arg5[%c0_22, %c0_23] : memref<128x256xbf16, #tpu.memory_space<vmem>>, vector<128x256xbf16>
    %cst_24 = arith.constant dense<0.000000e+00> : vector<64x256xf32>
    %38 = tpu.matmul %4, %37, %cst_24 {dimension_numbers = #tpu.dot_dimension_numbers<[1], [0], [0], [1], [0, 0, 1, 1], [], []>} : vector<64x128xbf16>, vector<128x256xbf16>, vector<64x256xf32> -> vector<64x256xf32>
    %c0_25 = arith.constant 0 : index
    %c0_26 = arith.constant 0 : index
    %39 = vector.load %arg6[%c0_25, %c0_26] : memref<1x256xf32, #tpu.memory_space<vmem>>, vector<1x256xf32>
    %40 = vector.broadcast %39 : vector<1x256xf32> to vector<64x256xf32>
    %41 = arith.addf %38, %40 : vector<64x256xf32>
    %42 = arith.truncf %36 : vector<32x128xf32> to vector<32x128xbf16>
    %43 = arith.truncf %41 : vector<64x256xf32> to vector<64x256xbf16>
    %44 = vector.extract_strided_slice %42 {offsets = [0, 0], sizes = [16, 32], strides = [1, 1]} : vector<32x128xbf16> to vector<16x32xbf16>
    %45 = vector.extract_strided_slice %43 {offsets = [0, 0], sizes = [32, 32], strides = [1, 1]} : vector<64x256xbf16> to vector<32x32xbf16>
    %46 = vector.extract_strided_slice %43 {offsets = [0, 128], sizes = [32, 32], strides = [1, 1]} : vector<64x256xbf16> to vector<32x32xbf16>
    %cst_27 = arith.constant dense<0.000000e+00> : vector<16x32xf32>
    %47 = tpu.matmul %44, %45, %cst_27 {dimension_numbers = #tpu.dot_dimension_numbers<[1], [1], [0], [0], [0, 0, 1, 0], [], []>} : vector<16x32xbf16>, vector<32x32xbf16>, vector<16x32xf32> -> vector<16x32xf32>
    %cst_28 = arith.constant dense<0xFF800000> : vector<16xf32>
    %48 = vector.multi_reduction <maximumf>, %47, %cst_28 [1] : vector<16x32xf32> to vector<16xf32>
    %49 = vector.shape_cast %48 : vector<16xf32> to vector<16x1xf32>
    %50 = vector.broadcast %49 : vector<16x1xf32> to vector<16x32xf32>
    %51 = arith.subf %47, %50 : vector<16x32xf32>
    %52 = math.exp %51 : vector<16x32xf32>
    %cst_29 = arith.constant dense<0.000000e+00> : vector<16xf32>
    %53 = vector.multi_reduction <add>, %52, %cst_29 [1] : vector<16x32xf32> to vector<16xf32>
    %54 = vector.shape_cast %53 : vector<16xf32> to vector<16x1xf32>
    %55 = tpu.reciprocal %54 {approx = true} : vector<16x1xf32> -> vector<16x1xf32>
    %56 = vector.broadcast %55 : vector<16x1xf32> to vector<16x32xf32>
    %57 = arith.mulf %52, %56 : vector<16x32xf32>
    %58 = arith.truncf %57 : vector<16x32xf32> to vector<16x32xbf16>
    %cst_30 = arith.constant dense<0.000000e+00> : vector<16x32xf32>
    %59 = tpu.matmul %58, %46, %cst_30 {dimension_numbers = #tpu.dot_dimension_numbers<[1], [0], [0], [1], [0, 0, 1, 1], [], []>} : vector<16x32xbf16>, vector<32x32xbf16>, vector<16x32xf32> -> vector<16x32xf32>
    %c0_31 = arith.constant 0 : index
    %c0_32 = arith.constant 0 : index
    %60 = vector.load %arg12[%c0_31, %c0_32] : memref<32x128xf32, #tpu.memory_space<vmem>>, vector<16x32xf32>
    tpu.vector_store %arg12[%c0_31, %c0_32], %59 {strides = array<i32>} : memref<32x128xf32, #tpu.memory_space<vmem>>, vector<16x32xf32>,
    %61 = vector.extract_strided_slice %42 {offsets = [0, 32], sizes = [16, 32], strides = [1, 1]} : vector<32x128xbf16> to vector<16x32xbf16>
    %62 = vector.extract_strided_slice %43 {offsets = [0, 32], sizes = [32, 32], strides = [1, 1]} : vector<64x256xbf16> to vector<32x32xbf16>
    %63 = vector.extract_strided_slice %43 {offsets = [0, 160], sizes = [32, 32], strides = [1, 1]} : vector<64x256xbf16> to vector<32x32xbf16>
    %cst_33 = arith.constant dense<0.000000e+00> : vector<16x32xf32>
    %64 = tpu.matmul %61, %62, %cst_33 {dimension_numbers = #tpu.dot_dimension_numbers<[1], [1], [0], [0], [0, 0, 1, 0], [], []>} : vector<16x32xbf16>, vector<32x32xbf16>, vector<16x32xf32> -> vector<16x32xf32>
    %cst_34 = arith.constant dense<0xFF800000> : vector<16xf32>
    %65 = vector.multi_reduction <maximumf>, %64, %cst_34 [1] : vector<16x32xf32> to vector<16xf32>
    %66 = vector.shape_cast %65 : vector<16xf32> to vector<16x1xf32>
    %67 = vector.broadcast %66 : vector<16x1xf32> to vector<16x32xf32>
    %68 = arith.subf %64, %67 : vector<16x32xf32>
    %69 = math.exp %68 : vector<16x32xf32>
    %cst_35 = arith.constant dense<0.000000e+00> : vector<16xf32>
    %70 = vector.multi_reduction <add>, %69, %cst_35 [1] : vector<16x32xf32> to vector<16xf32>
    %71 = vector.shape_cast %70 : vector<16xf32> to vector<16x1xf32>
    %72 = tpu.reciprocal %71 {approx = true} : vector<16x1xf32> -> vector<16x1xf32>
    %73 = vector.broadcast %72 : vector<16x1xf32> to vector<16x32xf32>
    %74 = arith.mulf %69, %73 : vector<16x32xf32>
    %75 = arith.truncf %74 : vector<16x32xf32> to vector<16x32xbf16>
    %cst_36 = arith.constant dense<0.000000e+00> : vector<16x32xf32>
    %76 = tpu.matmul %75, %63, %cst_36 {dimension_numbers = #tpu.dot_dimension_numbers<[1], [0], [0], [1], [0, 0, 1, 1], [], []>} : vector<16x32xbf16>, vector<32x32xbf16>, vector<16x32xf32> -> vector<16x32xf32>
    %c0_37 = arith.constant 0 : index
    %c32 = arith.constant 32 : index
    %77 = vector.load %arg12[%c0_37, %c32] : memref<32x128xf32, #tpu.memory_space<vmem>>, vector<16x32xf32>
    tpu.vector_store %arg12[%c0_37, %c32], %76 {strides = array<i32>} : memref<32x128xf32, #tpu.memory_space<vmem>>, vector<16x32xf32>,
    %78 = vector.extract_strided_slice %42 {offsets = [0, 64], sizes = [16, 32], strides = [1, 1]} : vector<32x128xbf16> to vector<16x32xbf16>
    %79 = vector.extract_strided_slice %43 {offsets = [0, 64], sizes = [32, 32], strides = [1, 1]} : vector<64x256xbf16> to vector<32x32xbf16>
    %80 = vector.extract_strided_slice %43 {offsets = [0, 192], sizes = [32, 32], strides = [1, 1]} : vector<64x256xbf16> to vector<32x32xbf16>
    %cst_38 = arith.constant dense<0.000000e+00> : vector<16x32xf32>
    %81 = tpu.matmul %78, %79, %cst_38 {dimension_numbers = #tpu.dot_dimension_numbers<[1], [1], [0], [0], [0, 0, 1, 0], [], []>} : vector<16x32xbf16>, vector<32x32xbf16>, vector<16x32xf32> -> vector<16x32xf32>
    %cst_39 = arith.constant dense<0xFF800000> : vector<16xf32>
    %82 = vector.multi_reduction <maximumf>, %81, %cst_39 [1] : vector<16x32xf32> to vector<16xf32>
    %83 = vector.shape_cast %82 : vector<16xf32> to vector<16x1xf32>
    %84 = vector.broadcast %83 : vector<16x1xf32> to vector<16x32xf32>
    %85 = arith.subf %81, %84 : vector<16x32xf32>
    %86 = math.exp %85 : vector<16x32xf32>
    %cst_40 = arith.constant dense<0.000000e+00> : vector<16xf32>
    %87 = vector.multi_reduction <add>, %86, %cst_40 [1] : vector<16x32xf32> to vector<16xf32>
    %88 = vector.shape_cast %87 : vector<16xf32> to vector<16x1xf32>
    %89 = tpu.reciprocal %88 {approx = true} : vector<16x1xf32> -> vector<16x1xf32>
    %90 = vector.broadcast %89 : vector<16x1xf32> to vector<16x32xf32>
    %91 = arith.mulf %86, %90 : vector<16x32xf32>
    %92 = arith.truncf %91 : vector<16x32xf32> to vector<16x32xbf16>
    %cst_41 = arith.constant dense<0.000000e+00> : vector<16x32xf32>
    %93 = tpu.matmul %92, %80, %cst_41 {dimension_numbers = #tpu.dot_dimension_numbers<[1], [0], [0], [1], [0, 0, 1, 1], [], []>} : vector<16x32xbf16>, vector<32x32xbf16>, vector<16x32xf32> -> vector<16x32xf32>
    %c0_42 = arith.constant 0 : index
    %c64 = arith.constant 64 : index
    %94 = vector.load %arg12[%c0_42, %c64] : memref<32x128xf32, #tpu.memory_space<vmem>>, vector<16x32xf32>
    tpu.vector_store %arg12[%c0_42, %c64], %93 {strides = array<i32>} : memref<32x128xf32, #tpu.memory_space<vmem>>, vector<16x32xf32>,
    %95 = vector.extract_strided_slice %42 {offsets = [0, 96], sizes = [16, 32], strides = [1, 1]} : vector<32x128xbf16> to vector<16x32xbf16>
    %96 = vector.extract_strided_slice %43 {offsets = [0, 96], sizes = [32, 32], strides = [1, 1]} : vector<64x256xbf16> to vector<32x32xbf16>
    %97 = vector.extract_strided_slice %43 {offsets = [0, 224], sizes = [32, 32], strides = [1, 1]} : vector<64x256xbf16> to vector<32x32xbf16>
    %cst_43 = arith.constant dense<0.000000e+00> : vector<16x32xf32>
    %98 = tpu.matmul %95, %96, %cst_43 {dimension_numbers = #tpu.dot_dimension_numbers<[1], [1], [0], [0], [0, 0, 1, 0], [], []>} : vector<16x32xbf16>, vector<32x32xbf16>, vector<16x32xf32> -> vector<16x32xf32>
    %cst_44 = arith.constant dense<0xFF800000> : vector<16xf32>
    %99 = vector.multi_reduction <maximumf>, %98, %cst_44 [1] : vector<16x32xf32> to vector<16xf32>
    %100 = vector.shape_cast %99 : vector<16xf32> to vector<16x1xf32>
    %101 = vector.broadcast %100 : vector<16x1xf32> to vector<16x32xf32>
    %102 = arith.subf %98, %101 : vector<16x32xf32>
    %103 = math.exp %102 : vector<16x32xf32>
    %cst_45 = arith.constant dense<0.000000e+00> : vector<16xf32>
    %104 = vector.multi_reduction <add>, %103, %cst_45 [1] : vector<16x32xf32> to vector<16xf32>
    %105 = vector.shape_cast %104 : vector<16xf32> to vector<16x1xf32>
    %106 = tpu.reciprocal %105 {approx = true} : vector<16x1xf32> -> vector<16x1xf32>
    %107 = vector.broadcast %106 : vector<16x1xf32> to vector<16x32xf32>
    %108 = arith.mulf %103, %107 : vector<16x32xf32>
    %109 = arith.truncf %108 : vector<16x32xf32> to vector<16x32xbf16>
    %cst_46 = arith.constant dense<0.000000e+00> : vector<16x32xf32>
    %110 = tpu.matmul %109, %97, %cst_46 {dimension_numbers = #tpu.dot_dimension_numbers<[1], [0], [0], [1], [0, 0, 1, 1], [], []>} : vector<16x32xbf16>, vector<32x32xbf16>, vector<16x32xf32> -> vector<16x32xf32>
    %c0_47 = arith.constant 0 : index
    %c96 = arith.constant 96 : index
    %111 = vector.load %arg12[%c0_47, %c96] : memref<32x128xf32, #tpu.memory_space<vmem>>, vector<16x32xf32>
    tpu.vector_store %arg12[%c0_47, %c96], %110 {strides = array<i32>} : memref<32x128xf32, #tpu.memory_space<vmem>>, vector<16x32xf32>,
    %112 = vector.extract_strided_slice %42 {offsets = [16, 0], sizes = [16, 32], strides = [1, 1]} : vector<32x128xbf16> to vector<16x32xbf16>
    %113 = vector.extract_strided_slice %43 {offsets = [32, 0], sizes = [32, 32], strides = [1, 1]} : vector<64x256xbf16> to vector<32x32xbf16>
    %114 = vector.extract_strided_slice %43 {offsets = [32, 128], sizes = [32, 32], strides = [1, 1]} : vector<64x256xbf16> to vector<32x32xbf16>
    %cst_48 = arith.constant dense<0.000000e+00> : vector<16x32xf32>
    %115 = tpu.matmul %112, %113, %cst_48 {dimension_numbers = #tpu.dot_dimension_numbers<[1], [1], [0], [0], [0, 0, 1, 0], [], []>} : vector<16x32xbf16>, vector<32x32xbf16>, vector<16x32xf32> -> vector<16x32xf32>
    %cst_49 = arith.constant dense<0xFF800000> : vector<16xf32>
    %116 = vector.multi_reduction <maximumf>, %115, %cst_49 [1] : vector<16x32xf32> to vector<16xf32>
    %117 = vector.shape_cast %116 : vector<16xf32> to vector<16x1xf32>
    %118 = vector.broadcast %117 : vector<16x1xf32> to vector<16x32xf32>
    %119 = arith.subf %115, %118 : vector<16x32xf32>
    %120 = math.exp %119 : vector<16x32xf32>
    %cst_50 = arith.constant dense<0.000000e+00> : vector<16xf32>
    %121 = vector.multi_reduction <add>, %120, %cst_50 [1] : vector<16x32xf32> to vector<16xf32>
    %122 = vector.shape_cast %121 : vector<16xf32> to vector<16x1xf32>
    %123 = tpu.reciprocal %122 {approx = true} : vector<16x1xf32> -> vector<16x1xf32>
    %124 = vector.broadcast %123 : vector<16x1xf32> to vector<16x32xf32>
    %125 = arith.mulf %120, %124 : vector<16x32xf32>
    %126 = arith.truncf %125 : vector<16x32xf32> to vector<16x32xbf16>
    %cst_51 = arith.constant dense<0.000000e+00> : vector<16x32xf32>
    %127 = tpu.matmul %126, %114, %cst_51 {dimension_numbers = #tpu.dot_dimension_numbers<[1], [0], [0], [1], [0, 0, 1, 1], [], []>} : vector<16x32xbf16>, vector<32x32xbf16>, vector<16x32xf32> -> vector<16x32xf32>
    %c16 = arith.constant 16 : index
    %c0_52 = arith.constant 0 : index
    %128 = vector.load %arg12[%c16, %c0_52] : memref<32x128xf32, #tpu.memory_space<vmem>>, vector<16x32xf32>
    tpu.vector_store %arg12[%c16, %c0_52], %127 {strides = array<i32>} : memref<32x128xf32, #tpu.memory_space<vmem>>, vector<16x32xf32>,
    %129 = vector.extract_strided_slice %42 {offsets = [16, 32], sizes = [16, 32], strides = [1, 1]} : vector<32x128xbf16> to vector<16x32xbf16>
    %130 = vector.extract_strided_slice %43 {offsets = [32, 32], sizes = [32, 32], strides = [1, 1]} : vector<64x256xbf16> to vector<32x32xbf16>
    %131 = vector.extract_strided_slice %43 {offsets = [32, 160], sizes = [32, 32], strides = [1, 1]} : vector<64x256xbf16> to vector<32x32xbf16>
    %cst_53 = arith.constant dense<0.000000e+00> : vector<16x32xf32>
    %132 = tpu.matmul %129, %130, %cst_53 {dimension_numbers = #tpu.dot_dimension_numbers<[1], [1], [0], [0], [0, 0, 1, 0], [], []>} : vector<16x32xbf16>, vector<32x32xbf16>, vector<16x32xf32> -> vector<16x32xf32>
    %cst_54 = arith.constant dense<0xFF800000> : vector<16xf32>
    %133 = vector.multi_reduction <maximumf>, %132, %cst_54 [1] : vector<16x32xf32> to vector<16xf32>
    %134 = vector.shape_cast %133 : vector<16xf32> to vector<16x1xf32>
    %135 = vector.broadcast %134 : vector<16x1xf32> to vector<16x32xf32>
    %136 = arith.subf %132, %135 : vector<16x32xf32>
    %137 = math.exp %136 : vector<16x32xf32>
    %cst_55 = arith.constant dense<0.000000e+00> : vector<16xf32>
    %138 = vector.multi_reduction <add>, %137, %cst_55 [1] : vector<16x32xf32> to vector<16xf32>
    %139 = vector.shape_cast %138 : vector<16xf32> to vector<16x1xf32>
    %140 = tpu.reciprocal %139 {approx = true} : vector<16x1xf32> -> vector<16x1xf32>
    %141 = vector.broadcast %140 : vector<16x1xf32> to vector<16x32xf32>
    %142 = arith.mulf %137, %141 : vector<16x32xf32>
    %143 = arith.truncf %142 : vector<16x32xf32> to vector<16x32xbf16>
    %cst_56 = arith.constant dense<0.000000e+00> : vector<16x32xf32>
    %144 = tpu.matmul %143, %131, %cst_56 {dimension_numbers = #tpu.dot_dimension_numbers<[1], [0], [0], [1], [0, 0, 1, 1], [], []>} : vector<16x32xbf16>, vector<32x32xbf16>, vector<16x32xf32> -> vector<16x32xf32>
    %c16_57 = arith.constant 16 : index
    %c32_58 = arith.constant 32 : index
    %145 = vector.load %arg12[%c16_57, %c32_58] : memref<32x128xf32, #tpu.memory_space<vmem>>, vector<16x32xf32>
    tpu.vector_store %arg12[%c16_57, %c32_58], %144 {strides = array<i32>} : memref<32x128xf32, #tpu.memory_space<vmem>>, vector<16x32xf32>,
    %146 = vector.extract_strided_slice %42 {offsets = [16, 64], sizes = [16, 32], strides = [1, 1]} : vector<32x128xbf16> to vector<16x32xbf16>
    %147 = vector.extract_strided_slice %43 {offsets = [32, 64], sizes = [32, 32], strides = [1, 1]} : vector<64x256xbf16> to vector<32x32xbf16>
    %148 = vector.extract_strided_slice %43 {offsets = [32, 192], sizes = [32, 32], strides = [1, 1]} : vector<64x256xbf16> to vector<32x32xbf16>
    %cst_59 = arith.constant dense<0.000000e+00> : vector<16x32xf32>
    %149 = tpu.matmul %146, %147, %cst_59 {dimension_numbers = #tpu.dot_dimension_numbers<[1], [1], [0], [0], [0, 0, 1, 0], [], []>} : vector<16x32xbf16>, vector<32x32xbf16>, vector<16x32xf32> -> vector<16x32xf32>
    %cst_60 = arith.constant dense<0xFF800000> : vector<16xf32>
    %150 = vector.multi_reduction <maximumf>, %149, %cst_60 [1] : vector<16x32xf32> to vector<16xf32>
    %151 = vector.shape_cast %150 : vector<16xf32> to vector<16x1xf32>
    %152 = vector.broadcast %151 : vector<16x1xf32> to vector<16x32xf32>
    %153 = arith.subf %149, %152 : vector<16x32xf32>
    %154 = math.exp %153 : vector<16x32xf32>
    %cst_61 = arith.constant dense<0.000000e+00> : vector<16xf32>
    %155 = vector.multi_reduction <add>, %154, %cst_61 [1] : vector<16x32xf32> to vector<16xf32>
    %156 = vector.shape_cast %155 : vector<16xf32> to vector<16x1xf32>
    %157 = tpu.reciprocal %156 {approx = true} : vector<16x1xf32> -> vector<16x1xf32>
    %158 = vector.broadcast %157 : vector<16x1xf32> to vector<16x32xf32>
    %159 = arith.mulf %154, %158 : vector<16x32xf32>
    %160 = arith.truncf %159 : vector<16x32xf32> to vector<16x32xbf16>
    %cst_62 = arith.constant dense<0.000000e+00> : vector<16x32xf32>
    %161 = tpu.matmul %160, %148, %cst_62 {dimension_numbers = #tpu.dot_dimension_numbers<[1], [0], [0], [1], [0, 0, 1, 1], [], []>} : vector<16x32xbf16>, vector<32x32xbf16>, vector<16x32xf32> -> vector<16x32xf32>
    %c16_63 = arith.constant 16 : index
    %c64_64 = arith.constant 64 : index
    %162 = vector.load %arg12[%c16_63, %c64_64] : memref<32x128xf32, #tpu.memory_space<vmem>>, vector<16x32xf32>
    tpu.vector_store %arg12[%c16_63, %c64_64], %161 {strides = array<i32>} : memref<32x128xf32, #tpu.memory_space<vmem>>, vector<16x32xf32>,
    %163 = vector.extract_strided_slice %42 {offsets = [16, 96], sizes = [16, 32], strides = [1, 1]} : vector<32x128xbf16> to vector<16x32xbf16>
    %164 = vector.extract_strided_slice %43 {offsets = [32, 96], sizes = [32, 32], strides = [1, 1]} : vector<64x256xbf16> to vector<32x32xbf16>
    %165 = vector.extract_strided_slice %43 {offsets = [32, 224], sizes = [32, 32], strides = [1, 1]} : vector<64x256xbf16> to vector<32x32xbf16>
    %cst_65 = arith.constant dense<0.000000e+00> : vector<16x32xf32>
    %166 = tpu.matmul %163, %164, %cst_65 {dimension_numbers = #tpu.dot_dimension_numbers<[1], [1], [0], [0], [0, 0, 1, 0], [], []>} : vector<16x32xbf16>, vector<32x32xbf16>, vector<16x32xf32> -> vector<16x32xf32>
    %cst_66 = arith.constant dense<0xFF800000> : vector<16xf32>
    %167 = vector.multi_reduction <maximumf>, %166, %cst_66 [1] : vector<16x32xf32> to vector<16xf32>
    %168 = vector.shape_cast %167 : vector<16xf32> to vector<16x1xf32>
    %169 = vector.broadcast %168 : vector<16x1xf32> to vector<16x32xf32>
    %170 = arith.subf %166, %169 : vector<16x32xf32>
    %171 = math.exp %170 : vector<16x32xf32>
    %cst_67 = arith.constant dense<0.000000e+00> : vector<16xf32>
    %172 = vector.multi_reduction <add>, %171, %cst_67 [1] : vector<16x32xf32> to vector<16xf32>
    %173 = vector.shape_cast %172 : vector<16xf32> to vector<16x1xf32>
    %174 = tpu.reciprocal %173 {approx = true} : vector<16x1xf32> -> vector<16x1xf32>
    %175 = vector.broadcast %174 : vector<16x1xf32> to vector<16x32xf32>
    %176 = arith.mulf %171, %175 : vector<16x32xf32>
    %177 = arith.truncf %176 : vector<16x32xf32> to vector<16x32xbf16>
    %cst_68 = arith.constant dense<0.000000e+00> : vector<16x32xf32>
    %178 = tpu.matmul %177, %165, %cst_68 {dimension_numbers = #tpu.dot_dimension_numbers<[1], [0], [0], [1], [0, 0, 1, 1], [], []>} : vector<16x32xbf16>, vector<32x32xbf16>, vector<16x32xf32> -> vector<16x32xf32>
    %c16_69 = arith.constant 16 : index
    %c96_70 = arith.constant 96 : index
    %179 = vector.load %arg12[%c16_69, %c96_70] : memref<32x128xf32, #tpu.memory_space<vmem>>, vector<16x32xf32>
    tpu.vector_store %arg12[%c16_69, %c96_70], %178 {strides = array<i32>} : memref<32x128xf32, #tpu.memory_space<vmem>>, vector<16x32xf32>,
    %c0_71 = arith.constant 0 : index
    %c0_72 = arith.constant 0 : index
    %180 = vector.load %arg12[%c0_71, %c0_72] : memref<32x128xf32, #tpu.memory_space<vmem>>, vector<32x128xf32>
    %181 = arith.addf %30, %180 : vector<32x128xf32>
    %cst_73 = arith.constant dense<0.000000e+00> : vector<32xf32>
    %182 = vector.multi_reduction <add>, %181, %cst_73 [1] : vector<32x128xf32> to vector<32xf32>
    %183 = vector.shape_cast %182 : vector<32xf32> to vector<32x1xf32>
    %cst_74 = arith.constant 1.280000e+02 : f32
    %184 = vector.broadcast %cst_74 : f32 to vector<32x1xf32>
    %185 = arith.divf %183, %184 : vector<32x1xf32>
    %186 = vector.broadcast %185 : vector<32x1xf32> to vector<32x128xf32>
    %187 = arith.subf %181, %186 : vector<32x128xf32>
    %188 = arith.mulf %187, %187 : vector<32x128xf32>
    %cst_75 = arith.constant dense<0.000000e+00> : vector<32xf32>
    %189 = vector.multi_reduction <add>, %188, %cst_75 [1] : vector<32x128xf32> to vector<32xf32>
    %190 = vector.shape_cast %189 : vector<32xf32> to vector<32x1xf32>
    %cst_76 = arith.constant 1.280000e+02 : f32
    %191 = vector.broadcast %cst_76 : f32 to vector<32x1xf32>
    %192 = arith.divf %190, %191 : vector<32x1xf32>
    %193 = vector.broadcast %185 : vector<32x1xf32> to vector<32x128xf32>
    %194 = arith.subf %181, %193 : vector<32x128xf32>
    %cst_77 = arith.constant 9.99999974E-6 : f32
    %195 = vector.broadcast %cst_77 : f32 to vector<32x1xf32>
    %196 = arith.addf %192, %195 : vector<32x1xf32>
    %197 = math.rsqrt %196 : vector<32x1xf32>
    %198 = vector.broadcast %197 : vector<32x1xf32> to vector<32x128xf32>
    %199 = arith.mulf %194, %198 : vector<32x128xf32>
    %200 = vector.broadcast %7 : vector<1x128xf32> to vector<32x128xf32>
    %201 = arith.mulf %199, %200 : vector<32x128xf32>
    %202 = vector.broadcast %8 : vector<1x128xf32> to vector<32x128xf32>
    %203 = arith.addf %201, %202 : vector<32x128xf32>
    %204 = vector.shape_cast %203 : vector<32x128xf32> to vector<2x16x128xf32>
    %c0_78 = arith.constant 0 : index
    %c0_79 = arith.constant 0 : index
    %c0_80 = arith.constant 0 : index
    %205 = vector.load %arg11[%c0_78, %c0_79, %c0_80] : memref<2x16x128xf32, #tpu.memory_space<vmem>>, vector<2x16x128xf32>
    tpu.vector_store %arg11[%c0_78, %c0_79, %c0_80], %204 {strides = array<i32>} : memref<2x16x128xf32, #tpu.memory_space<vmem>>, vector<2x16x128xf32>,
    return
  }
  func.func @transform_0(%arg0: i32) -> (i32, i32, i32) {
    %c0_i32 = arith.constant 0 : i32
    %c0_i32_0 = arith.constant 0 : i32
    %c0_i32_1 = arith.constant 0 : i32
    return %arg0, %c0_i32, %c0_i32_0 : i32, i32, i32
  }
  func.func @transform_1(%arg0: i32) -> (i32, i32, i32) {
    %c0_i32 = arith.constant 0 : i32
    %c0_i32_0 = arith.constant 0 : i32
    %c0_i32_1 = arith.constant 0 : i32
    return %arg0, %c0_i32, %c0_i32_0 : i32, i32, i32
  }
  func.func @transform_2(%arg0: i32) -> (i32, i32) {
    %c0_i32 = arith.constant 0 : i32
    %c0_i32_0 = arith.constant 0 : i32
    %c0_i32_1 = arith.constant 0 : i32
    return %c0_i32, %c0_i32_0 : i32, i32
  }
  func.func @transform_3(%arg0: i32) -> (i32, i32) {
    %c0_i32 = arith.constant 0 : i32
    %c0_i32_0 = arith.constant 0 : i32
    %c0_i32_1 = arith.constant 0 : i32
    return %c0_i32, %c0_i32_0 : i32, i32
  }
  func.func @transform_4(%arg0: i32) -> (i32, i32) {
    %c0_i32 = arith.constant 0 : i32
    %c0_i32_0 = arith.constant 0 : i32
    %c0_i32_1 = arith.constant 0 : i32
    return %c0_i32, %c0_i32_0 : i32, i32
  }
  func.func @transform_5(%arg0: i32) -> (i32, i32) {
    %c0_i32 = arith.constant 0 : i32
    %c0_i32_0 = arith.constant 0 : i32
    %c0_i32_1 = arith.constant 0 : i32
    return %c0_i32, %c0_i32_0 : i32, i32
  }
  func.func @transform_6(%arg0: i32) -> (i32, i32) {
    %c0_i32 = arith.constant 0 : i32
    %c0_i32_0 = arith.constant 0 : i32
    %c0_i32_1 = arith.constant 0 : i32
    return %c0_i32, %c0_i32_0 : i32, i32
  }
  func.func @transform_7(%arg0: i32) -> (i32, i32) {
    %c0_i32 = arith.constant 0 : i32
    %c0_i32_0 = arith.constant 0 : i32
    %c0_i32_1 = arith.constant 0 : i32
    return %c0_i32, %c0_i32_0 : i32, i32
  }
  func.func @transform_8(%arg0: i32) -> (i32, i32) {
    %c0_i32 = arith.constant 0 : i32
    %c0_i32_0 = arith.constant 0 : i32
    %c0_i32_1 = arith.constant 0 : i32
    return %c0_i32, %c0_i32_0 : i32, i32
  }
  func.func @transform_9(%arg0: i32) -> (i32, i32) {
    %c0_i32 = arith.constant 0 : i32
    %c0_i32_0 = arith.constant 0 : i32
    %c0_i32_1 = arith.constant 0 : i32
    return %c0_i32, %c0_i32_0 : i32, i32
  }
  func.func @transform_10(%arg0: i32) -> (i32, i32, i32) {
    %c0_i32 = arith.constant 0 : i32
    %c0_i32_0 = arith.constant 0 : i32
    %c0_i32_1 = arith.constant 0 : i32
    return %arg0, %c0_i32, %c0_i32_0 : i32, i32, i32
  }
}

</mosaic_0001>

<bundles_post_ra>
// kernel: tpu_custom_call.1
= control target key start
LH: loop header
LB: loop body
LE: loop exit
PB: predicated region body
PF: predicated region fallthrough
CT: control target
= control target key end

     0   :  { %s3502_s0 = inlined_call_operand.hbm [shape: f32[4,16,128], index: 0, kind: input, shape index: {}]   ;;  %s3503_s1 = inlined_call_operand.hbm [shape: f32[4,32,128], index: 1, kind: input, shape index: {}]   ;;  %s3504_s2 = inlined_call_operand.hbm [shape: bf16[128,128], index: 2, kind: input, shape index: {}]   ;;  %s3505_s3 = inlined_call_operand.vmem [shape: f32[1,128], index: 3, kind: input, shape index: {}]   ;;  %s3506_s4 = inlined_call_operand.hbm [shape: bf16[128,256], index: 4, kind: input, shape index: {}]   ;;  %s3507_s5 = inlined_call_operand.vmem [shape: f32[1,256], index: 5, kind: input, shape index: {}]   ;;  %s3508_s6 = inlined_call_operand.vmem [shape: f32[1,128], index: 6, kind: input, shape index: {}]   ;;  %s3509_s7 = inlined_call_operand.vmem [shape: f32[1,128], index: 7, kind: input, shape index: {}]   ;;  %s3510_s8 = inlined_call_operand.vmem [shape: f32[1,128], index: 8, kind: input, shape index: {}]   ;;  %s3511_s9 = inlined_call_operand.vmem [shape: f32[1,128], index: 9, kind: input, shape index: {}]   ;;  %s3512_s10 = inlined_call_operand.hbm [shape: f32[4,16,128], index: 10, kind: output, shape index: {}]  }
   0x1   :  { %3525 = sst [smem:[#allocation22_spill]] %s3502_s0 }
   0x2   :  { %3526 = sst [smem:[#allocation23_spill]] %s3504_s2 }
   0x3   :  { %3527 = sst [smem:[#allocation24_spill]] %s3506_s4 }
   0x4   :  { %15 = vsyncpa [#allocation4], 0 }
   0x5   :  { %17 = vsyncpa [#allocation4 + $0x1], 0 }
   0x6   :  { %18 = vsyncpa [#allocation7], 0 }
   0x7   :  { %20 = vsyncpa [#allocation7 + $0x1], 0 }
   0x8   :  { %21 = vsyncpa [#allocation10], 0 }
   0x9   :  { %22 = vsyncpa [#allocation5], 0 }
   0xa   :  { %24 = vsyncpa [#allocation5 + $0x1], 0  ;;  %s2879_s13 = smov 0   ;;  %s2881_s14 = smov 0  }
   0xb   :  { %s2883_s15 = smov 0   ;;  %s2885_s16 = smov 0  }
   0xc LB: > { %3528 = sst [smem:[#allocation17_spill]] %s2793_s13  ;;  %s2900_s17 = sadd.s32 4294967295, %s2805_s16   ;;  %s2805_s16 = sphi %s2885_s16, %s3557_s16   ;;  %s2801_s15 = sphi %s2883_s15, %s3559_s15   ;;  %s2797_s14 = sphi %s2881_s14, %s3561_s14   ;;  %s2793_s13 = sphi %s2879_s13, %s3560_s13  }
   0xd   : > { %3529 = sst [smem:[#allocation18_spill]] %s2801_s15  ;;  %s2143_s18 = sadd.s32 4294967294, %s2805_s16  }
   0xe   : > { %p50_p0 = scmp.ne.s32.totalorder %s2797_s14, %s2793_s13  ;;  %p3513_p1 = scmp.eq.s32.totalorder %s2900_s17, 0 }
   0xf   : > { %p274_p3 = scmp.eq.s32.totalorder %s2143_s18, 1  ;;  %p2144_p5 = scmp.ge.s32.totalorder %s2805_s16, 1 }
  0x10   : > { %p2909_p4 = por %p3513_p1, %p50_p0  ;;  %p281_p7 = scmp.lt.s32.totalorder %s2805_s16, 3 }
  0x11   : > { %p2914_p6 = por %p274_p3, %p50_p0  ;;  %s2807_s22 = smov [#allocation8]  }
  0x12   : > { %s3530_s19 = scalar_select %p2909_p4, 1, 0 }
  0x13   : > { %s3531_s20 = scalar_select %p2914_p6, 1, 0 }
  0x14   : > { %p2919_p8 = pnand %p2144_p5, %p281_p7  ;;  %s293_s23 = sshll.u32 %s2807_s22, 4  ;;  %s294_s23 = int_to_ptr.vmem [resolvable:$true] %s293_s23 }
  0x15   : > { %3532 = sst [smem:[#allocation19_spill]] %s3531_s20  ;;  %s2808_s25 = smov [#allocation9]  }
  0x16   : > { %p2439_p9 = pneg %p2919_p8  ;;  %s309_s26 = sshll.u32 %s2808_s25, 4  ;;  %s310_s26 = int_to_ptr.vmem [resolvable:$true] %s309_s26 }
  0x17   : > { %s2632_s27 = scalar_lea.vmem %s294_s23, 1024  ;;  %p2640_p5 = scmp.lt.s32.totalorder %s294_s23, %s294_s23 }
  0x18   : > { %p2928_p11 = pnand %p2439_p9, %p3513_p1  ;;  %p2633_p13 = scmp.ne.s32.totalorder %s294_s23, %s2632_s27 }
  0x19   : > { %p2641_p7 = scmp.lt.s32.totalorder %s2632_s27, %s2632_s27 }
  0x1a   : > { %p2623_p12 = pneg %p2928_p11 }
  0x1b   : > { %p2642_p10 = por %p2641_p7, %p2640_p5 }
  0x1c   : > { %p2635_p0 = pnand %p2633_p13, %p2623_p12 }
  0x1e   : > { %p2636_p3 = pneg %p2635_p0 }
  0x20   : > { %p2643_p9 = pnand %p2642_p10, %p2636_p3 }
  0x22   : > { %2646 = shalt.err (!%p2643_p9)
}
  0x23   : > { %s2809_s28 = smov 64   ;;  %s2810_s29 = smov 4  }
  0x24   : > { %s3535_s2 = sld [smem:[#allocation23_spill]]  ;;  %s2658_s12 = scalar_lea.vmem %s310_s26, 2048 }
  0x25   : > { %p2659_p1 = scmp.ne.s32.totalorder %s310_s26, %s2658_s12  ;;  %p2666_p2 = scmp.lt.s32.totalorder %s310_s26, %s310_s26 }
  0x26   : > { %p2667_p6 = scmp.lt.s32.totalorder %s2658_s12, %s2658_s12 }
  0x27   : > { %p2661_p13 = pnand %p2659_p1, %p2623_p12 }
  0x28   : > { %p2668_p5 = por %p2667_p6, %p2666_p2 }
  0x29   : > { %p2662_p0 = pneg %p2661_p13 }
  0x2a   : > { %2442 = dma.hbm_to_vmem [thread:$0]  (!%p2928_p11), %s3535_s2, 1024, %s294_s23, [#allocation7], %s2809_s28, %s2809_s28, %s2810_s29  }
  0x2b   : > { %p2669_p10 = pnand %p2668_p5, %p2662_p0 }
  0x2d   : > { %2672 = shalt.err (!%p2669_p10)
}
  0x2e   : > { %s3514_s18 = smov 128   ;;  %s3516_s22 = smov 8  }
  0x2f   : > { %s3536_s4 = sld [smem:[#allocation24_spill]]  ;;  %s2954_s27 = sadd.s32 1, %s2805_s16  }
  0x30   : > { %3537 = sst [smem:[#allocation20_spill]] %s2954_s27  ;;  %s34_s28 = ssub.s32 %s2805_s16, %s2954_s27 }
  0x31   : > { %p35_p1 = scmp.eq.s32.totalorder %s34_s28, 0  ;;  %s37_s29 = sadd.s32 1, %s2801_s15 }
  0x32   : > { %p44_p2 = scmp.ne.s32.totalorder %s2801_s15, %s2797_s14  ;;  %p45_p6 = scmp.eq.s32.totalorder %s2805_s16, 0 }
  0x33   : > { %s2963_s30 = scalar_select %p35_p1, %s2801_s15, %s37_s29  }
  0x34   : > { %p46_p12 = por %p45_p6, %p44_p2  ;;  %p3539_p3 = scmp.eq.s32.totalorder %s2900_s17, 1 }
  0x35   : > { %2445 = dma.hbm_to_vmem [thread:$0]  (!%p2928_p11), %s3536_s4, 2048, %s310_s26, [#allocation10], %s3514_s18, %s3514_s18, %s3516_s22  }
  0x36   : > { %3538 = sst [smem:[#allocation21_spill]] %s2963_s30  ;;  %p2967_p7 = por %p3539_p3, %p44_p2 }
  0x37   : > { %p2459_p9 = scmp.lt.s32.totalorder %s2805_s16, 2  ;;  %s2973_s11 = sand.u32 1, %s2801_s15  }
  0x38   : > { %s3540_s24 = scalar_select %p2967_p7, 1, 0 }
  0x39   : > { %s2148_s26 = sshll.u32 %s2973_s11, 5  ;;  %s2214_s12 = sshll.u32 %s2805_s16, 9 }
  0x3a   : > { %s3541_s0 = sld [smem:[#allocation22_spill]]  ;;  %s342_s29 = scalar_lea.vmem [#allocation3], %s2148_s26 }
  0x3b   : > { %s350_s18 = sshll.u32 %s342_s29, 4  ;;  %p2984_p11 = pnand %p2459_p9, %p46_p12  ;;  %s2982_s18 = int_to_ptr.vmem [resolvable:$true] %s350_s18 }
  0x3c   : > { %s339_s30 = scalar_lea.sflag [#allocation4], %s2973_s11 }
  0x3d   : > { %p2675_p0 = pneg %p2984_p11 }
  0x40   : > { %s2980_s28 = scalar_lea.hbm %s3541_s0, %s2214_s12  ;;  %s2678_s23 = scalar_lea.hbm %s3541_s0, 1024 }
  0x41   : > { %s2673_s15 = scalar_lea.hbm %s2980_s28, 512  ;;  %p2679_p1 = scmp.lt.s32.totalorder %s2980_s28, %s3541_s0 }
  0x42   : > { %p2674_p13 = scmp.ne.s32.totalorder %s2980_s28, %s2673_s15  ;;  %p2680_p2 = scmp.lt.s32.totalorder %s2678_s23, %s2673_s15 }
  0x44   : > { %p2676_p5 = pnand %p2675_p0, %p2674_p13  ;;  %p2681_p6 = por %p2680_p2, %p2679_p1 }
  0x46   : > { %p2677_p10 = pneg %p2676_p5 }
  0x48   : > { %p2682_p12 = pnand %p2681_p6, %p2677_p10 }
  0x4a   : > { %2685 = shalt.err (!%p2682_p12)
}
  0x4b   : > { %s2686_s2 = scalar_lea.vmem %s2982_s18, 512  ;;  %s2813_s26 = smov [#allocation3]  }
  0x4c   : > { %p2687_p3 = scmp.ne.s32.totalorder %s2982_s18, %s2686_s2  ;;  %s2691_s12 = sshll.u32 %s2813_s26, 4  ;;  %s2692_s12 = int_to_ptr.vmem [resolvable:$false] %s2691_s12 }
  0x4d   : > { %s2693_s4 = scalar_lea.vmem %s2692_s12, 1024  ;;  %p2694_p5 = scmp.lt.s32.totalorder %s2982_s18, %s2692_s12 }
  0x4e   : > { %p2689_p9 = pnand %p2687_p3, %p2675_p0  ;;  %p2695_p7 = scmp.lt.s32.totalorder %s2693_s4, %s2686_s2 }
  0x50   : > { %p2690_p13 = pneg %p2689_p9  ;;  %p2696_p4 = por %p2695_p7, %p2694_p5 }
  0x52   : > { %p2697_p1 = pnand %p2696_p4, %p2690_p13 }
  0x54   : > { %2700 = shalt.err (!%p2697_p1)
}
  0x55   : > { %s3543_s15 = smov 8   ;;  %s3544_s23 = smov 128  }
  0x56   : > { %2449 = dma.hbm_to_vmem [thread:$0]  (!%p2984_p11), %s2980_s28, 512, %s2982_s18, %s339_s30, %s3544_s23, %s3544_s23, %s3543_s15  }
  0x57   : > { %s2216_s25 = sshll.u32 %s2805_s16, 10  ;;  %s3545_s26 = sshll.u32 %s2973_s11, 6 }
  0x58   : > { %s3024_s4 = scalar_lea.hbm %s3503_s1, %s2216_s25  ;;  %s364_s12 = scalar_lea.vmem [#allocation6], %s3545_s26 }
  0x59   : > { %s372_s0 = sshll.u32 %s364_s12, 4  ;;  %s3546_s27 = sand.u32 1, %s2805_s16   ;;  %s3028_s0 = int_to_ptr.vmem [resolvable:$true] %s372_s0 }
  0x5a   : > { %s361_s20 = scalar_lea.sflag [#allocation7], %s3546_s27  ;;  %s2701_s13 = scalar_lea.hbm %s3024_s4, 1024 }
  0x5b   : > { %p2702_p4 = scmp.ne.s32.totalorder %s3024_s4, %s2701_s13  ;;  %s2706_s28 = scalar_lea.hbm %s3503_s1, 2048 }
  0x5c   : > { %p2707_p2 = scmp.lt.s32.totalorder %s3024_s4, %s3503_s1  ;;  %p2708_p6 = scmp.lt.s32.totalorder %s2706_s28, %s2701_s13 }
  0x5d   : > { %p2704_p7 = pnand %p2702_p4, %p2675_p0 }
  0x5e   : > { %p2709_p12 = por %p2708_p6, %p2707_p2 }
  0x5f   : > { %p2705_p10 = pneg %p2704_p7 }
  0x61   : > { %p2710_p3 = pnand %p2709_p12, %p2705_p10 }
  0x63   : > { %2713 = shalt.err (!%p2710_p3)
}
  0x64   : > { %s2714_s27 = scalar_lea.vmem %s3028_s0, 1024  ;;  %s2814_s29 = smov [#allocation6]  }
  0x65   : > { %p2715_p9 = scmp.ne.s32.totalorder %s3028_s0, %s2714_s27  ;;  %s2719_s2 = sshll.u32 %s2814_s29, 4  ;;  %s2720_s2 = int_to_ptr.vmem [resolvable:$false] %s2719_s2 }
  0x66   : > { %s2721_s26 = scalar_lea.vmem %s2720_s2, 2048  ;;  %p2722_p1 = scmp.lt.s32.totalorder %s3028_s0, %s2720_s2 }
  0x67   : > { %p2717_p13 = pnand %p2715_p9, %p2675_p0  ;;  %p2723_p4 = scmp.lt.s32.totalorder %s2721_s26, %s2714_s27 }
  0x69   : > { %p2718_p5 = pneg %p2717_p13  ;;  %p2724_p7 = por %p2723_p4, %p2722_p1 }
  0x6b   : > { %p2725_p2 = pnand %p2724_p7, %p2718_p5 }
  0x6d   : > { %2728 = shalt.err (!%p2725_p2)
}
  0x6e   : > { %2452 = dma.hbm_to_vmem [thread:$0]  (!%p2984_p11), %s3024_s4, 1024, %s3028_s0, %s361_s20, %s3544_s23, %s3544_s23, %s3543_s15  }
  0x6f   : > { %384 = sbr.rel (%p2919_p8) target bundleno = 5076 (0x13d4), region = 60  ;;  %s3060_s13 = sand.u32 (!%p2919_p8), 1, %s2797_s14  }
  0x70   : > { %s2157_s12 = sshll.u32 (!%p2919_p8), %s3060_s13, 5  ;;  %s387_s18 = scalar_lea.sflag (!%p2919_p8), [#allocation4], %s3060_s13 }
  0x71   : > { %s390_s22 = scalar_lea.vmem (!%p2919_p8), [#allocation3], %s2157_s12  ;;  %p3547_p0 = scmp.ne.s32.totalorder (!%p2919_p8), %s3530_s19, 0 }
  0x74   : > { %2772 = dma.done.wait (%p3547_p0), %s387_s18, 512  }
  0x75   : > { %2774 = vsyncadd (%p3547_p0), %s387_s18, 4294966784  ;;  %s395_s0 = sand.u32 1, %s2900_s17   ;;  %s2158_s20 = sshll.u32 %s3060_s13, 6 }
  0x76   : > { %s396_s21 = scalar_lea.sflag [#allocation7], %s395_s0  ;;  %s3072_s15 = scalar_lea.vmem [#allocation6], %s2158_s20 }
  0x77   : > { %2776 = dma.done.wait (%p3547_p0), %s396_s21, 1024  }
  0x78   : > { %2778 = vsyncadd (%p3547_p0), %s396_s21, 4294966272  ;;  %p3548_p8 = scmp.eq.s32.totalorder %s2900_s17, 0 }
  0x7a   : > { %2780 = dma.done.wait (%p3548_p8), [#allocation7], 1024   ;;  %p3549_p11 = pmov %p3548_p8 }
  0x7b   : > { %p3550_p10 = pmov %p3548_p8 }
  0x7c   : > { %2782 = vsyncadd (%p3549_p11), [#allocation7], 4294966272 }
  0x7d   : > { %2784 = dma.done.wait (%p3550_p10), [#allocation10], 2048   ;;  %p3551_p6 = pmov %p3548_p8 }
  0x7e   : > { %v453_v0 = vld [vmem:[%s390_s22] sm:$0xff]  ;;  %v455_v1 = vld [vmem:[%s390_s22 + $0x10] sm:$0xff]  ;;  %v454_v2 = vld [vmem:[%s390_s22 + $0x8] sm:$0xff]  ;;  %v2815_v9 = vmov 0   ;;  %v678_v51 = vlaneseq  ;;  %v2816_v52 = vmov 0.0   ;;  %s2817_s4 = smov 96  }
  0x7f   : > { %2786 = vsyncadd (%p3551_p6), [#allocation10], 4294965248  ;;  %473 = vadd.xlane.f32.xlu0 %v453_v0  ;;  %477 = vadd.xlane.f32.xlu1 %v455_v1  ;;  %v456_v3 = vld [vmem:[%s390_s22 + $0x18] sm:$0xff]  ;;  %v2512_v6 = vld [vmem:[#allocation9 + $0x64] ss:$8 sps:$4 sm:$0xff]   ;;  %vm851_vm0 = vcmask 261120  }
  0x80   : > { %v2509_v4 = vld [vmem:[#allocation9 + $0x74] ss:$8 sps:$4 sm:$0xff]   ;;  %v2511_v5 = vld [vmem:[#allocation9 + $0x70] ss:$8 sps:$4 sm:$0xff]   ;;  %v2514_v7 = vld [vmem:[#allocation9 + $0x60] ss:$8 sps:$4 sm:$0xff]   ;;  %800 = vmatprep.mubr.bf16.mxu1 %v2815_v9 }
  0x81   : > { %768 = vmatprep.subr.bf16.mxu1 %v2509_v4  ;;  %v2515_v8 = vld [vmem:[#allocation9 + $0x54] ss:$8 sps:$4 sm:$0xff]   ;;  %v2517_v10 = vld [vmem:[#allocation9 + $0x50] ss:$8 sps:$4 sm:$0xff]   ;;  %v2518_v11 = vld [vmem:[#allocation9 + $0x44] ss:$8 sps:$4 sm:$0xff]  }
  0x82   : > { %769 = vmatpush1.bf16.msra.mxu1 %v2511_v5  ;;  %v2520_v12 = vld [vmem:[#allocation9 + $0x40] ss:$8 sps:$4 sm:$0xff]   ;;  %v2521_v13 = vld [vmem:[#allocation9 + $0x34] ss:$8 sps:$4 sm:$0xff]   ;;  %v2523_v14 = vld [vmem:[#allocation9 + $0x30] ss:$8 sps:$4 sm:$0xff]  }
  0x83   : > { %475 = vadd.xlane.f32.xlu0 %v454_v2  ;;  %479 = vadd.xlane.f32.xlu1 %v456_v3  ;;  %v2524_v15 = vld [vmem:[#allocation9 + $0x24] ss:$8 sps:$4 sm:$0xff]   ;;  %v2526_v16 = vld [vmem:[#allocation9 + $0x20] ss:$8 sps:$4 sm:$0xff]   ;;  %v2527_v17 = vld [vmem:[#allocation9 + $0x14] ss:$8 sps:$4 sm:$0xff]  }
  0x84   : > { %770 = vmatprep.subr.bf16.mxu1 %v2512_v6  ;;  %v2529_v18 = vld [vmem:[#allocation9 + $0x10] ss:$8 sps:$4 sm:$0xff]   ;;  %v2530_v19 = vld [vmem:[#allocation9 + $0x4] ss:$8 sps:$4 sm:$0xff]   ;;  %v2532_v20 = vld [vmem:[#allocation9] ss:$8 sps:$4 sm:$0xff]  }
  0x85   : > { %v457_v21 = vld [vmem:[%s3072_s15] sm:$0xff]  ;;  %v458_v22 = vld [vmem:[%s3072_s15 + $0x8] sm:$0xff]  ;;  %v459_v24 = vld [vmem:[%s3072_s15 + $0x10] sm:$0xff]  ;;  %v679_v53 = vshrl.u32 %v678_v51, 7  ;;  %vm2818_vm1 = vmmov 0   ;;  %s2819_s2 = smov 64  }
  0x86   : > { %771 = vmatpush1.bf16.msra.mxu1 %v2514_v7  ;;  %v465_v23 = vpack.c.bf16 %v458_v22, %v457_v21  ;;  %v460_v25 = vld [vmem:[%s3072_s15 + $0x18] sm:$0xff]  ;;  %v2534_v44 = vld [vmem:[#allocation8 + $0x30] sm:$0xff]   ;;  %v2535_v45 = vld [vmem:[#allocation8 + $0x28] sm:$0xff]   ;;  %s2820_s26 = smov 32   ;;  %vm1113_vm2 = vcmask 523520   ;;  %vm1253_vm3 = vcmask 785920  }
  0x87   : > { %772 = vmatprep.subr.bf16.mxu1 %v2515_v8  ;;  %v466_v26 = vpack.c.bf16 %v460_v25, %v459_v24  ;;  %v2533_v43 = vld [vmem:[#allocation8 + $0x38] sm:$0xff]   ;;  %v2536_v46 = vld [vmem:[#allocation8 + $0x20] sm:$0xff]   ;;  %v2538_v48 = vld [vmem:[#allocation8 + $0x10] sm:$0xff]   ;;  %v684_v54 = vsub.s32 1, %v679_v53  ;;  %v680_v57 = vsub.s32 0, %v679_v53  ;;  %vm1393_vm4 = vcmask 1048320  }
  0x88   : > { %2277 = vmatprep.subr.bf16.mxu0 %v2533_v43  ;;  %v2537_v47 = vld [vmem:[#allocation8 + $0x18] sm:$0xff]   ;;  %v2539_v49 = vld [vmem:[#allocation8 + $0x8] sm:$0xff]   ;;  %v2540_v50 = vld [vmem:[#allocation8] sm:$0xff]   ;;  %s448_s21 = scalar_lea.vmem [#allocation11], %s2157_s12  ;;  %s2218_s12 = sshll.u32 %s2900_s17, 9 }
  0x89   : > { %2278 = vmatpush3.bf16.msra.mxu0 %v2533_v43  ;;  %v676_v55 = vld [vmem:[%s3507_s5] sm:$0x3]  ;;  %v463_v53 = vld [vmem:[%s3072_s15 + $0x30] sm:$0xff]  ;;  %s2014_s30 = scalar_lea.sflag [#allocation5], %s3060_s13  ;;  %p3552_p3 = scmp.ne.s32.totalorder %s3540_s24, 0 }
  0x8a   : > { %773 = vmatpush1.bf16.msra.mxu1 %v2517_v10  ;;  %2279 = vmatprep.subr.bf16.mxu0 %v2534_v44  ;;  %v3114_v56 = vrot.slane %v676_v55, %v684_v54  ;;  %v3116_v59 = vrot.slane %v676_v55, %v680_v57  ;;  %v464_v54 = vld [vmem:[%s3072_s15 + $0x38] sm:$0xff]  ;;  %s2821_s17 = smov [#allocation11]  }
  0x8b   : > { %774 = vmatprep.subr.bf16.mxu1 %v2518_v11  ;;  %v468_v57 = vpack.c.bf16 %v464_v54, %v463_v53  ;;  %s2733_s11 = sshll.u32 %s2821_s17, 4  ;;  %s2734_s11 = int_to_ptr.vmem [resolvable:$false] %s2733_s11 }
  0x8c   : > { %s2735_s25 = scalar_lea.vmem %s2734_s11, 1024 }
  0x8d   : > { %2280 = vmatpush3.bf16.msra.mxu0 %v2534_v44 }
  0x8e   : > { %775 = vmatpush1.bf16.msra.mxu1 %v2520_v12  ;;  %2281 = vmatprep.subr.bf16.mxu0 %v2535_v45 }
  0x8f   : > { %776 = vmatprep.subr.bf16.mxu1 %v2521_v13 }
  0x91   : > { %2282 = vmatpush3.bf16.msra.mxu0 %v2535_v45 }
  0x92   : > { %777 = vmatpush1.bf16.msra.mxu1 %v2523_v14  ;;  %2283 = vmatprep.subr.bf16.mxu0 %v2536_v46 }
  0x93   : > { %778 = vmatprep.subr.bf16.mxu1 %v2524_v15 }
  0x95   : > { %2284 = vmatpush3.bf16.msra.mxu0 %v2536_v46 }
  0x96   : > { %779 = vmatpush1.bf16.msra.mxu1 %v2526_v16  ;;  %2285 = vmatprep.subr.bf16.mxu0 %v2537_v47 }
  0x97   : > { %780 = vmatprep.subr.bf16.mxu1 %v2527_v17 }
  0x99   : > { %2286 = vmatpush3.bf16.msra.mxu0 %v2537_v47  ;;  %v461_v47 = vld [vmem:[%s3072_s15 + $0x20] sm:$0xff] }
  0x9a   : > { %781 = vmatpush1.bf16.msra.mxu1 %v2529_v18  ;;  %2287 = vmatprep.subr.bf16.mxu0 %v2538_v48 }
  0x9b   : > { %782 = vmatprep.subr.bf16.mxu1 %v2530_v19 }
  0x9d   : > { %2288 = vmatpush3.bf16.msra.mxu0 %v2538_v48  ;;  %v462_v48 = vld [vmem:[%s3072_s15 + $0x28] sm:$0xff]  ;;  %s2028_s15 = sshll.u32 %s448_s21, 4  ;;  %s3459_s15 = int_to_ptr.vmem [resolvable:$true] %s2028_s15 }
  0x9e   : > { %783 = vmatpush1.bf16.msra.mxu1 %v2532_v20  ;;  %2289 = vmatprep.subr.bf16.mxu0 %v2539_v49  ;;  %s2729_s28 = scalar_lea.vmem %s3459_s15, 512  ;;  %p2736_p5 = scmp.lt.s32.totalorder %s3459_s15, %s2734_s11 }
  0x9f   : > { %2313 = vmatprep.subr.bf16.mxu1 %v2816_v52  ;;  %p2730_p12 = scmp.ne.s32.totalorder %s3459_s15, %s2729_s28  ;;  %p2737_p1 = scmp.lt.s32.totalorder %s2735_s25, %s2729_s28 }
  0xa1   : > { %801 = vmatmul.mubr.bf16.vlgmr.msra.gmra.mxu1 %v465_v23  ;;  %2290 = vmatpush3.bf16.msra.mxu0 %v2539_v49  ;;  %p2731_p9 = pnand %p2730_p12, %p3552_p3  ;;  %p2738_p4 = por %p2737_p1, %p2736_p5 }
  0xa2   : > { %810 = vmatprep.mubr.bf16.mxu1 %v2815_v9  ;;  %2291 = vmatprep.subr.bf16.mxu0 %v2540_v50 }
  0xa3   : > { %p2732_p13 = pneg %p2731_p9 }
  0xa5   : > { %2292 = vmatpush3.bf16.msra.mxu0 %v2540_v50  ;;  %v467_v50 = vpack.c.bf16 %v462_v48, %v461_v47  ;;  %p2739_p7 = pnand %p2738_p4, %p2732_p13 }
  0xa6   : > { %2297 = vmatprep.subr.bf16.mxu0 %v2816_v52 }
  0xa9   : > { %811 = vmatmul.mubr.bf16.gmra.mxu1 %v466_v26  ;;  %v2162_v26 = vld [vmem:[%s3508_s6] ss:$0 sm:$0xff] }
  0xaa   : > { %820 = vmatprep.mubr.bf16.mxu1 %v2815_v9 }
  0xb1   : > { %821 = vmatmul.mubr.bf16.gmra.mxu1 %v467_v50 }
  0xb2   : > { %830 = vmatprep.mubr.bf16.mxu1 %v2815_v9 }
  0xb9   : > { %831 = vmatmul.mubr.bf16.gmra.mxu1 %v468_v57 }
  0xba   : > { %2317 = vmatprep.mubr.msk.bf16.mxu1 %vm2818_vm1, %v2816_v52 }
 0x108   : > { %v474_v27 = vpop.xlane.xlu0 %473  ;;  %v478_v28 = vpop.xlane.xlu1 %477 }
 0x109   : > { %v482_v29 = vmul.f32 0.0078125, %v474_v27  ;;  %v484_v30 = vmul.f32 0.0078125, %v478_v28 }
 0x10b   : > { %v3093_v31 = vsub.f32 %v453_v0, %v482_v29  ;;  %v3095_v32 = vsub.f32 %v455_v1, %v484_v30 }
 0x10c   : > { %v476_v33 = vpop.xlane.xlu0 %475  ;;  %v480_v34 = vpop.xlane.xlu1 %479 }
 0x10d   : > { %v483_v35 = vmul.f32 0.0078125, %v476_v33  ;;  %v490_v36 = vmul.f32 %v3093_v31, %v3093_v31  ;;  %v485_v37 = vmul.f32 0.0078125, %v480_v34  ;;  %v492_v40 = vmul.f32 %v3095_v32, %v3095_v32  ;;  %v2163_v33 = vld [vmem:[%s3509_s7] ss:$0 sm:$0xff] }
 0x10f   : > { %v3099_v38 = vsub.f32 %v454_v2, %v483_v35  ;;  %494 = vadd.xlane.f32.xlu0 %v490_v36  ;;  %v3101_v39 = vsub.f32 %v456_v3, %v485_v37 }
 0x111   : > { %v491_v41 = vmul.f32 %v3099_v38, %v3099_v38  ;;  %v493_v42 = vmul.f32 %v3101_v39, %v3101_v39 }
 0x113   : > { %498 = vadd.xlane.f32.xlu0 %v492_v40  ;;  %496 = vadd.xlane.f32.xlu1 %v491_v41 }
 0x117   : > { %500 = vadd.xlane.f32.xlu1 %v493_v42 }
 0x161   : > { %v802_v58 = vpop.f32.mrf.mxu1 }
 0x162   : > { %v803_v61 = vadd.f32 %v802_v58, %v3116_v59  ;;  %v2164_v58 = vld [vmem:[%s3505_s3] ss:$0 sm:$0xff] }
 0x163   : > { %v804_v60 = vpop.f32.mrf.mxu1 }
 0x164   : > { %v805_v63 = vadd.f32 %v804_v60, %v3114_v56 }
 0x165   : > { %v806_v62 = vpop.f32.mrf.mxu1 }
 0x166   : > { %v807_v0 = vadd.f32 %v806_v62, %v3116_v59 }
 0x167   : > { %v808_v1 = vpop.f32.mrf.mxu1 }
 0x168   : > { %v3121_v2 = vpack.c.bf16 %v807_v0, %v803_v61  ;;  %v809_v3 = vadd.f32 %v808_v1, %v3114_v56 }
 0x169   : > { %v812_v4 = vpop.f32.mrf.mxu1 }
 0x16a   : > { %v3124_v5 = vpack.c.bf16 %v809_v3, %v805_v63  ;;  %976 = vrot.lane.b32.xlu1 %v3121_v2, %s2817_s4  ;;  %v813_v7 = vadd.f32 %v812_v4, %v3116_v59 }
 0x16b   : > { %v3128_v6 = vpop.f32.mrf.mxu1 }
 0x16c   : > { %v815_v1 = vadd.f32 %v3128_v6, %v3114_v56 }
 0x16d   : > { %v816_v8 = vpop.f32.mrf.mxu1 }
 0x16e   : > { %v817_v10 = vadd.f32 %v816_v8, %v3116_v59 }
 0x16f   : > { %v818_v9 = vpop.f32.mrf.mxu1 }
 0x170   : > { %v3132_v11 = vpack.c.bf16 %v817_v10, %v813_v7  ;;  %v819_v3 = vadd.f32 %v818_v9, %v3114_v56 }
 0x171   : > { %v822_v6 = vpop.f32.mrf.mxu1 }
 0x172   : > { %978 = vrot.lane.b32.xlu0 %v3132_v11, %s2817_s4  ;;  %v859_v45 = vsel %vm851_vm0, %v3132_v11, 0 }
 0x198   : > { %v495_v12 = vpop.xlane.xlu0 %494 }
 0x199   : > { %v502_v13 = vmul.f32 0.0078125, %v495_v12 }
 0x19b   : > { %v506_v14 = vadd.f32 1e-05, %v502_v13  ;;  %v3187_v13 = vpack.c.bf16 %v819_v3, %v815_v1 }
 0x19c   : > { %v497_v15 = vpop.xlane.xlu1 %496  ;;  %v499_v16 = vpop.xlane.xlu0 %498 }
 0x19d   : > { %2541 = vrsqrt.f32 %v506_v14  ;;  %v503_v17 = vmul.f32 0.0078125, %v497_v15  ;;  %v504_v18 = vmul.f32 0.0078125, %v499_v16  ;;  %v824_v14 = vpop.f32.mrf.mxu1  ;;  %v823_v15 = vadd.f32 %v822_v6, %v3116_v59 }
 0x19f   : > { %v507_v19 = vadd.f32 1e-05, %v503_v17  ;;  %v508_v20 = vadd.f32 1e-05, %v504_v18  ;;  %v826_v16 = vpop.f32.mrf.mxu1  ;;  %v825_v17 = vadd.f32 %v824_v14, %v3114_v56 }
 0x1a0   : > { %v501_v21 = vpop.xlane.xlu1 %500  ;;  %v827_v18 = vadd.f32 %v826_v16, %v3116_v59 }
 0x1a1   : > { %2543 = vrsqrt.f32 %v507_v19  ;;  %v505_v22 = vmul.f32 0.0078125, %v501_v21  ;;  %v828_v19 = vpop.f32.mrf.mxu1 }
 0x1a2   : > { %2545 = vrsqrt.f32 %v508_v20  ;;  %v3202_v20 = vpack.c.bf16 %v827_v18, %v823_v15  ;;  %v829_v21 = vadd.f32 %v828_v19, %v3114_v56 }
 0x1a3   : > { %v509_v23 = vadd.f32 1e-05, %v505_v22  ;;  %v832_v22 = vpop.f32.mrf.mxu1 }
 0x1a5   : > { %2547 = vrsqrt.f32 %v509_v23  ;;  %v3205_v23 = vpack.c.bf16 %v829_v21, %v825_v17 }
 0x1aa   : > { %v2542_v24 = vpop.eup %2541 }
 0x1ab   : > { %v514_v25 = vmul.f32 %v2542_v24, %v3093_v31  ;;  %v3207_v24 = vpop.f32.mrf.mxu1 }
 0x1ad   : > { %v524_v30 = vmul.f32 %v2162_v26, %v514_v25  ;;  %v833_v25 = vadd.f32 %v832_v22, %v3116_v59 }
 0x1ae   : > { %v2544_v27 = vpop.eup %2543 }
 0x1af   : > { %v2546_v28 = vpop.eup %2545  ;;  %v515_v29 = vmul.f32 %v2544_v27, %v3099_v38  ;;  %v3145_v37 = vadd.f32 %v2163_v33, %v524_v30 }
 0x1b0   : > { %v516_v34 = vmul.f32 %v2546_v28, %v3095_v32 }
 0x1b1   : > { %v525_v35 = vmul.f32 %v2162_v26, %v515_v29 }
 0x1b2   : > { %v2548_v36 = vpop.eup %2547  ;;  %v526_v41 = vmul.f32 %v2162_v26, %v516_v34 }
 0x1b3   : > { %v3147_v31 = vadd.f32 %v2163_v33, %v525_v35  ;;  %v517_v40 = vmul.f32 %v2548_v36, %v3101_v39  ;;  %v856_v39 = vsel %vm851_vm0, %v3121_v2, 0 }
 0x1b4   : > { %v3152_v43 = vadd.f32 %v2163_v33, %v526_v41 }
 0x1b5   : > { %v538_v42 = vpack.c.bf16 %v3147_v31, %v3145_v37  ;;  %v527_v38 = vmul.f32 %v2162_v26, %v517_v40  ;;  %v836_v26 = vpop.f32.mrf.mxu1 }
 0x1b6   : > { %v837_v27 = vadd.f32 %v836_v26, %v3116_v59 }
 0x1b7   : > { %2293 = vmatprep.mubr.bf16.mxu0 %v538_v42  ;;  %v3154_v32 = vadd.f32 %v2163_v33, %v527_v38  ;;  %v3220_v59 = vpop.f32.mrf.mxu1 }
 0x1b8   : > { %v3211_v28 = vpack.c.bf16 %v837_v27, %v833_v25 }
 0x1b9   : > { %v539_v44 = vpack.c.bf16 %v3154_v32, %v3152_v43 }
 0x1bb   : > { %2294 = vmatmul.mubr.bf16.vlgmr.msra.gmra.mxu0 %v539_v44 }
 0x1bc   : > { %2298 = vmatpush3.bf16.xpose.msra.mxu0 %v859_v45  ;;  %2301 = vmatprep.mubr.msk.bf16.mxu0 %vm2818_vm1, %v2816_v52 }
 0x1bd   : > { %2299 = vmatprep.subr.bf16.mxu0 %v2816_v52 }
 0x1c4   : > { %2300 = vmatpush3.bf16.xpose.msra.mxu0 %v856_v39 }
 0x1c5   : > { %2305 = vmatprep.subr.bf16.mxu0 %v2816_v52 }
 0x1dc   : > { %v977_v51 = vpop.permute.xlu1 %976 }
 0x1dd   : > { %v984_v55 = vsel %vm851_vm0, %v977_v51, 0 }
 0x1e4   : > { %v979_v46 = vpop.permute.xlu0 %978 }
 0x1e5   : > { %v987_v49 = vsel %vm851_vm0, %v979_v46, 0 }
 0x1e6   : > { %2314 = vmatpush3.bf16.xpose.msra.mxu1 %v987_v49 }
 0x1e7   : > { %2315 = vmatprep.subr.bf16.mxu1 %v2816_v52 }
 0x1ee   : > { %2316 = vmatpush3.bf16.xpose.msra.mxu1 %v984_v55 }
 0x1ef   : > { %2337 = vmatprep.subr.bf16.mxu1 %v2816_v52 }
 0x27b   : > { %v2295_v60 = vpop.f32.mrf.mxu0 }
 0x27c   : > { %v654_v61 = vadd.f32 %v2295_v60, %v2164_v58 }
 0x27d   : > { %v645_v62 = vpop.f32.mrf.mxu0 }
 0x27e   : > { %v646_v7 = vadd.f32 %v2164_v58, %v645_v62 }
 0x27f   : > { %v2296_v63 = vpop.f32.mrf.mxu0 }
 0x280   : > { %v657_v0 = vadd.f32 %v2296_v63, %v2164_v58 }
 0x281   : > { %v648_v4 = vpop.f32.mrf.mxu0 }
 0x282   : > { %v3183_v8 = vpack.c.bf16 %v657_v0, %v654_v61  ;;  %v649_v10 = vadd.f32 %v2164_v58, %v648_v4 }
 0x284   : > { %v3185_v12 = vpack.c.bf16 %v649_v10, %v646_v7 }
 0x286   : > { %972 = vrot.lane.b32.xlu1 %v3185_v12, %s2817_s4  ;;  %2302 = vmatmul.mubr.msk.bf16.vlgmr.msra.gmra.mxu0 %vm851_vm0, %v3185_v12 }
 0x287   : > { %2306 = vmatpush3.bf16.msra.mxu0 %v3187_v13  ;;  %2309 = vmatprep.mubr.msk.bf16.mxu0 %vm2818_vm1, %v2816_v52 }
 0x288   : > { %2307 = vmatprep.subr.bf16.mxu0 %v2816_v52 }
 0x28b   : > { %2308 = vmatpush3.bf16.msra.mxu0 %v3124_v5 }
 0x28c   : > { %2321 = vmatprep.subr.bf16.mxu0 %v2816_v52 }
 0x2f8   : > { %v973_v29 = vpop.permute.xlu1 %972 }
 0x2f9   : > { %2318 = vmatmul.mubr.msk.bf16.vlgmr.msra.gmra.mxu1 %vm851_vm0, %v973_v29 }
 0x2fa   : > { %2341 = vmatprep.mubr.msk.bf16.mxu1 %vm2818_vm1, %v2816_v52 }
 0x346   : > { %v895_v30 = vpop.f32.mrf.mxu0 }
 0x347   : > { %v902_v33 = vsel %vm851_vm0, %v895_v30, -inf }
 0x348   : > { %903 = vmax.xlane.f32.xlu1 %v902_v33  ;;  %v2303_v34 = vpop.f32.mrf.mxu0 }
 0x34a   : > { %v898_v35 = vpop.f32.mrf.mxu0 }
 0x34b   : > { %v905_v36 = vsel %vm851_vm0, %v898_v35, -inf }
 0x34c   : > { %906 = vmax.xlane.f32.xlu0 %v905_v36  ;;  %v2304_v40 = vpop.f32.mrf.mxu0 }
 0x359   : > { %1057 = vrot.lane.b32.xlu1 %v3187_v13, %s2817_s4 }
 0x3b9   : > { %v1023_v41 = vpop.f32.mrf.mxu1 }
 0x3ba   : > { %v1030_v42 = vsel %vm851_vm0, %v1023_v41, -inf }
 0x3bb   : > { %1031 = vmax.xlane.f32.xlu0 %v1030_v42  ;;  %v2319_v38 = vpop.f32.mrf.mxu1 }
 0x3bd   : > { %v1026_v44 = vpop.f32.mrf.mxu1 }
 0x3be   : > { %v1033_v45 = vsel %vm851_vm0, %v1026_v44, -inf }
 0x3bf   : > { %1034 = vmax.xlane.f32.xlu0 %v1033_v45  ;;  %v2320_v39 = vpop.f32.mrf.mxu1 }
 0x3d1   : > { %v904_v46 = vpop.xlane.xlu1 %903 }
 0x3d2   : > { %v908_v47 = vsub.f32 %v895_v30, %v904_v46 }
 0x3d4   : > { %v910_v48 = vmul.f32 1.442695, %v908_v47 }
 0x3d5   : > { %v907_v49 = vpop.xlane.xlu0 %906  ;;  %v1058_v7 = vpop.permute.xlu1 %1057 }
 0x3d6   : > { %2549 = vpow2.f32 %v910_v48  ;;  %v909_v50 = vsub.f32 %v898_v35, %v907_v49 }
 0x3d8   : > { %v912_v51 = vmul.f32 1.442695, %v909_v50 }
 0x3da   : > { %2551 = vpow2.f32 %v912_v51 }
 0x3e3   : > { %v2550_v53 = vpop.eup %2549 }
 0x3e4   : > { %v914_v54 = vsel %vm851_vm0, %v2550_v53, 0.0 }
 0x3e5   : > { %915 = vadd.xlane.f32.xlu1 %v914_v54 }
 0x3e7   : > { %v2552_v55 = vpop.eup %2551 }
 0x3e8   : > { %v917_v57 = vsel %vm851_vm0, %v2552_v55, 0.0 }
 0x3e9   : > { %918 = vadd.xlane.f32.xlu0 %v917_v57 }
 0x444   : > { %v1032_v58 = vpop.xlane.xlu0 %1031 }
 0x445   : > { %v1036_v60 = vsub.f32 %v1023_v41, %v1032_v58 }
 0x447   : > { %v1038_v61 = vmul.f32 1.442695, %v1036_v60 }
 0x448   : > { %v1035_v62 = vpop.xlane.xlu0 %1034 }
 0x449   : > { %2553 = vpow2.f32 %v1038_v61  ;;  %v1037_v9 = vsub.f32 %v1026_v44, %v1035_v62 }
 0x44b   : > { %v1040_v63 = vmul.f32 1.442695, %v1037_v9 }
 0x44d   : > { %2555 = vpow2.f32 %v1040_v63 }
 0x456   : > { %v2554_v0 = vpop.eup %2553 }
 0x457   : > { %v1042_v1 = vsel %vm851_vm0, %v2554_v0, 0.0 }
 0x458   : > { %1043 = vadd.xlane.f32.xlu1 %v1042_v1 }
 0x45a   : > { %v2556_v3 = vpop.eup %2555 }
 0x45b   : > { %v1045_v4 = vsel %vm851_vm0, %v2556_v3, 0.0 }
 0x45c   : > { %1046 = vadd.xlane.f32.xlu0 %v1045_v4 }
 0x469   : > { %1120 = vrot.lane.b32.xlu1 %v3132_v11, %s2819_s2 }
 0x46d   : > { %1118 = vrot.lane.b32.xlu1 %v3121_v2, %s2819_s2 }
 0x46e   : > { %v916_v10 = vpop.xlane.xlu1 %915 }
 0x46f   : > { %2557 = vrcp.f32 %v916_v10 }
 0x471   : > { %1116 = vrot.lane.b32.xlu1 %v3185_v12, %s2819_s2 }
 0x472   : > { %1055 = vrot.lane.b32.xlu0 %v3124_v5, %s2817_s4  ;;  %v919_v6 = vpop.xlane.xlu0 %918 }
 0x473   : > { %2559 = vrcp.f32 %v919_v6 }
 0x47c   : > { %v2558_v14 = vpop.eup %2557 }
 0x47d   : > { %v922_v16 = vmul.f32 %v2558_v14, %v2550_v53 }
 0x480   : > { %v2560_v15 = vpop.eup %2559 }
 0x481   : > { %v923_v17 = vmul.f32 %v2560_v15, %v2552_v55 }
 0x483   : > { %v924_v18 = vpack.c.bf16 %v923_v17, %v922_v16 }
 0x485   : > { %2310 = vmatmul.mubr.msk.bf16.vlgmr.msra.gmra.mxu0 %vm851_vm0, %v924_v18 }
 0x486   : > { %2322 = vmatpush3.bf16.msra.mxu0 %v1058_v7  ;;  %2325 = vmatprep.mubr.msk.bf16.mxu0 %vm2818_vm1, %v2816_v52 }
 0x487   : > { %2323 = vmatprep.subr.bf16.mxu0 %v2816_v52 }
 0x4e1   : > { %v1044_v19 = vpop.xlane.xlu1 %1043 }
 0x4e2   : > { %2561 = vrcp.f32 %v1044_v19  ;;  %v835_v19 = vadd.f32 %v3207_v24, %v3114_v56 }
 0x4e5   : > { %v1047_v21 = vpop.xlane.xlu0 %1046  ;;  %v1121_v30 = vpop.permute.xlu1 %1120 }
 0x4e6   : > { %2563 = vrcp.f32 %v1047_v21  ;;  %v1129_v34 = vsel %vm851_vm0, %v1121_v30, 0  ;;  %v839_v21 = vadd.f32 %v3220_v59, %v3114_v56 }
 0x4e9   : > { %v1056_v22 = vpop.permute.xlu0 %1055  ;;  %v1119_v35 = vpop.permute.xlu1 %1118 }
 0x4ea   : > { %2324 = vmatpush3.bf16.msra.mxu0 %v1056_v22  ;;  %v1126_v36 = vsel %vm851_vm0, %v1119_v35, 0  ;;  %v3284_v22 = vpack.c.bf16 %v839_v21, %v835_v19 }
 0x4eb   : > { %2329 = vmatprep.subr.bf16.mxu0 %v2816_v52 }
 0x4ed   : > { %v1117_v40 = vpop.permute.xlu1 %1116 }
 0x4ef   : > { %v2562_v25 = vpop.eup %2561 }
 0x4f0   : > { %v1050_v27 = vmul.f32 %v2562_v25, %v2554_v0 }
 0x4f3   : > { %v2564_v26 = vpop.eup %2563 }
 0x4f4   : > { %v1051_v29 = vmul.f32 %v2564_v26, %v2556_v3 }
 0x4f6   : > { %v1052_v33 = vpack.c.bf16 %v1051_v29, %v1050_v27 }
 0x4f8   : > { %2326 = vmatmul.mubr.msk.bf16.vlgmr.msra.gmra.mxu0 %vm851_vm0, %v1052_v33 }
 0x4f9   : > { %2330 = vmatpush3.bf16.xpose.msra.mxu0 %v1129_v34  ;;  %2333 = vmatprep.mubr.msk.bf16.mxu0 %vm2818_vm1, %v2816_v52 }
 0x4fa   : > { %2331 = vmatprep.subr.bf16.mxu0 %v2816_v52 }
 0x501   : > { %2332 = vmatpush3.bf16.xpose.msra.mxu0 %v1126_v36 }
 0x502   : > { %2353 = vmatprep.subr.bf16.mxu0 %v2816_v52 }
 0x508   : > { %2334 = vmatmul.mubr.msk.bf16.vlgmr.msra.gmra.mxu0 %vm851_vm0, %v1117_v40 }
 0x509   : > { %2357 = vmatprep.mubr.msk.bf16.mxu0 %vm2818_vm1, %v2816_v52 }
 0x545   : > { %v962_v41 = vpop.f32.mrf.mxu0 }
 0x546   : > { %969 = vst.msk [vmem:[#allocation2] sm:$0xff] %vm851_vm0, %v962_v41 }
 0x547   : > { %v2311_v42 = vpop.f32.mrf.mxu0 }
 0x549   : > { %v965_v38 = vpop.f32.mrf.mxu0 }
 0x54a   : > { %970 = vst.msk [vmem:[#allocation2 + $0x8] sm:$0xff] %vm851_vm0, %v965_v38 }
 0x54b   : > { %v2312_v44 = vpop.f32.mrf.mxu0 }
 0x5b8   : > { %v3253_v45 = vpop.f32.mrf.mxu0 }
 0x5ba   : > { %v2327_v39 = vpop.f32.mrf.mxu0 }
 0x5bc   : > { %v3255_v46 = vpop.f32.mrf.mxu0 }
 0x5be   : > { %v2328_v47 = vpop.f32.mrf.mxu0 }
 0x5c8   : > { %v1165_v48 = vpop.f32.mrf.mxu0 }
 0x5c9   : > { %v1172_v49 = vsel %vm851_vm0, %v1165_v48, -inf }
 0x5ca   : > { %1173 = vmax.xlane.f32.xlu0 %v1172_v49  ;;  %v2335_v50 = vpop.f32.mrf.mxu0 }
 0x5cc   : > { %v1168_v51 = vpop.f32.mrf.mxu0 }
 0x5cd   : > { %v1175_v53 = vsel %vm851_vm0, %v1168_v51, -inf }
 0x5ce   : > { %1176 = vmax.xlane.f32.xlu1 %v1175_v53  ;;  %v2336_v54 = vpop.f32.mrf.mxu0 }
 0x5df   : > { %1195 = vrot.lane.b32.xlu1 %v3124_v5, %s2819_s2 }
 0x5e3   : > { %1260 = vrot.lane.b32.xlu1 %v3132_v11, %s2820_s26 }
 0x5e7   : > { %1258 = vrot.lane.b32.xlu1 %v3121_v2, %s2820_s26 }
 0x653   : > { %v1174_v55 = vpop.xlane.xlu0 %1173 }
 0x654   : > { %v1178_v57 = vsub.f32 %v1165_v48, %v1174_v55 }
 0x656   : > { %v1180_v58 = vmul.f32 1.442695, %v1178_v57 }
 0x657   : > { %v1177_v60 = vpop.xlane.xlu1 %1176 }
 0x658   : > { %2565 = vpow2.f32 %v1180_v58  ;;  %v1179_v61 = vsub.f32 %v1168_v51, %v1177_v60 }
 0x65a   : > { %v1182_v62 = vmul.f32 1.442695, %v1179_v61  ;;  %v1403_v61 = vsel %vm851_vm0, %v3211_v28, 0 }
 0x65b   : > { %v1196_v4 = vpop.permute.xlu1 %1195 }
 0x65c   : > { %2567 = vpow2.f32 %v1182_v62 }
 0x65f   : > { %v1261_v15 = vpop.permute.xlu1 %1260 }
 0x663   : > { %v1259_v17 = vpop.permute.xlu1 %1258 }
 0x664   : > { %v1266_v18 = vsel %vm851_vm0, %v1259_v17, 0 }
 0x665   : > { %v2566_v9 = vpop.eup %2565 }
 0x666   : > { %v1184_v63 = vsel %vm851_vm0, %v2566_v9, 0.0 }
 0x667   : > { %1185 = vadd.xlane.f32.xlu0 %v1184_v63 }
 0x669   : > { %v2568_v0 = vpop.eup %2567 }
 0x66a   : > { %v1187_v1 = vsel %vm851_vm0, %v2568_v0, 0.0 }
 0x66b   : > { %1188 = vadd.xlane.f32.xlu0 %v1187_v1 }
 0x681   : > { %1197 = vrot.lane.b32.xlu0 %v3187_v13, %s2819_s2 }
 0x685   : > { %1256 = vrot.lane.b32.xlu0 %v3185_v12, %s2820_s26  ;;  %v1269_v12 = vsel %vm851_vm0, %v1261_v15, 0 }
 0x6f0   : > { %v1186_v2 = vpop.xlane.xlu0 %1185 }
 0x6f1   : > { %2569 = vrcp.f32 %v1186_v2 }
 0x6f4   : > { %v1189_v11 = vpop.xlane.xlu0 %1188 }
 0x6f5   : > { %2571 = vrcp.f32 %v1189_v11 }
 0x6f8   : > { %v1198_v3 = vpop.permute.xlu0 %1197 }
 0x6f9   : > { %2338 = vmatpush3.bf16.msra.mxu1 %v1198_v3 }
 0x6fa   : > { %2339 = vmatprep.subr.bf16.mxu1 %v2816_v52 }
 0x6fc   : > { %v1257_v25 = vpop.permute.xlu0 %1256 }
 0x6fd   : > { %2340 = vmatpush3.bf16.msra.mxu1 %v1196_v4 }
 0x6fe   : > { %2345 = vmatprep.subr.bf16.mxu1 %v2816_v52  ;;  %v2570_v7 = vpop.eup %2569 }
 0x6ff   : > { %v1192_v6 = vmul.f32 %v2570_v7, %v2566_v9 }
 0x702   : > { %v2572_v10 = vpop.eup %2571 }
 0x703   : > { %v1193_v14 = vmul.f32 %v2572_v10, %v2568_v0 }
 0x705   : > { %v1194_v16 = vpack.c.bf16 %v1193_v14, %v1192_v6 }
 0x707   : > { %2342 = vmatmul.mubr.msk.bf16.vlgmr.msra.gmra.mxu1 %vm851_vm0, %v1194_v16 }
 0x708   : > { %2346 = vmatpush3.bf16.xpose.msra.mxu1 %v1269_v12  ;;  %2349 = vmatprep.mubr.msk.bf16.mxu1 %vm2818_vm1, %v2816_v52 }
 0x709   : > { %2347 = vmatprep.subr.bf16.mxu1 %v2816_v52 }
 0x710   : > { %2348 = vmatpush3.bf16.xpose.msra.mxu1 %v1266_v18 }
 0x711   : > { %2369 = vmatprep.subr.bf16.mxu1 %v2816_v52 }
 0x717   : > { %2350 = vmatmul.mubr.msk.bf16.vlgmr.msra.gmra.mxu1 %vm851_vm0, %v1257_v25 }
 0x718   : > { %2370 = vmatpush3.bf16.msra.mxu1 %v3284_v22  ;;  %2373 = vmatprep.mubr.msk.bf16.mxu1 %vm2818_vm1, %v2816_v52 }
 0x719   : > { %2371 = vmatprep.subr.bf16.mxu1 %v2816_v52 }
 0x71c   : > { %2372 = vmatpush3.bf16.msra.mxu1 %v3205_v23 }
 0x71d   : > { %2377 = vmatprep.subr.bf16.mxu1 %v2816_v52 }
 0x7c7   : > { %v3293_v24 = vpop.f32.mrf.mxu1 }
 0x7c9   : > { %v2343_v26 = vpop.f32.mrf.mxu1 }
 0x7cb   : > { %v3295_v56 = vpop.f32.mrf.mxu1 }
 0x7cd   : > { %v2344_v59 = vpop.f32.mrf.mxu1 }
 0x7d7   : > { %v1305_v27 = vpop.f32.mrf.mxu1 }
 0x7d8   : > { %v1312_v29 = vsel %vm851_vm0, %v1305_v27, -inf }
 0x7d9   : > { %1313 = vmax.xlane.f32.xlu1 %v1312_v29  ;;  %v2351_v30 = vpop.f32.mrf.mxu1 }
 0x7db   : > { %v1308_v33 = vpop.f32.mrf.mxu1 }
 0x7dc   : > { %v1315_v34 = vsel %vm851_vm0, %v1308_v33, -inf }
 0x7dd   : > { %1316 = vmax.xlane.f32.xlu0 %v1315_v34  ;;  %v2352_v35 = vpop.f32.mrf.mxu1 }
 0x7ea   : > { %1337 = vrot.lane.b32.xlu1 %v3187_v13, %s2820_s26 }
 0x862   : > { %v1314_v36 = vpop.xlane.xlu1 %1313 }
 0x863   : > { %v1318_v40 = vsub.f32 %v1305_v27, %v1314_v36 }
 0x865   : > { %v1320_v41 = vmul.f32 1.442695, %v1318_v40 }
 0x866   : > { %v1338_v42 = vpop.permute.xlu1 %1337  ;;  %v1317_v38 = vpop.xlane.xlu0 %1316 }
 0x867   : > { %2573 = vpow2.f32 %v1320_v41  ;;  %v1319_v44 = vsub.f32 %v1308_v33, %v1317_v38  ;;  %2354 = vmatpush3.bf16.msra.mxu0 %v1338_v42 }
 0x868   : > { %2355 = vmatprep.subr.bf16.mxu0 %v2816_v52 }
 0x869   : > { %v1322_v39 = vmul.f32 1.442695, %v1319_v44 }
 0x86b   : > { %2575 = vpow2.f32 %v1322_v39 }
 0x874   : > { %v2574_v47 = vpop.eup %2573 }
 0x875   : > { %v1324_v48 = vsel %vm851_vm0, %v2574_v47, 0.0 }
 0x876   : > { %1325 = vadd.xlane.f32.xlu0 %v1324_v48 }
 0x878   : > { %v2576_v49 = vpop.eup %2575 }
 0x879   : > { %v1327_v50 = vsel %vm851_vm0, %v2576_v49, 0.0 }
 0x87a   : > { %1328 = vadd.xlane.f32.xlu0 %v1327_v50 }
 0x890   : > { %1335 = vrot.lane.b32.xlu0 %v3124_v5, %s2820_s26  ;;  %v1400_v5 = vsel %vm851_vm0, %v3202_v20, 0 }
 0x8ff   : > { %v1326_v13 = vpop.xlane.xlu0 %1325 }
 0x900   : > { %2577 = vrcp.f32 %v1326_v13 }
 0x903   : > { %v1329_v51 = vpop.xlane.xlu0 %1328 }
 0x904   : > { %2579 = vrcp.f32 %v1329_v51 }
 0x907   : > { %v1336_v53 = vpop.permute.xlu0 %1335 }
 0x908   : > { %2356 = vmatpush3.bf16.msra.mxu0 %v1336_v53 }
 0x909   : > { %2361 = vmatprep.subr.bf16.mxu0 %v2816_v52 }
 0x90d   : > { %v2578_v54 = vpop.eup %2577 }
 0x90e   : > { %v1332_v57 = vmul.f32 %v2578_v54, %v2574_v47 }
 0x911   : > { %v2580_v55 = vpop.eup %2579 }
 0x912   : > { %v1333_v58 = vmul.f32 %v2580_v55, %v2576_v49 }
 0x914   : > { %v1334_v60 = vpack.c.bf16 %v1333_v58, %v1332_v57 }
 0x916   : > { %2358 = vmatmul.mubr.msk.bf16.vlgmr.msra.gmra.mxu0 %vm851_vm0, %v1334_v60 }
 0x917   : > { %2362 = vmatpush3.bf16.xpose.msra.mxu0 %v1403_v61  ;;  %2365 = vmatprep.mubr.msk.bf16.mxu0 %vm2818_vm1, %v2816_v52 }
 0x918   : > { %2363 = vmatprep.subr.bf16.mxu0 %v2816_v52 }
 0x91f   : > { %2364 = vmatpush3.bf16.xpose.msra.mxu0 %v1400_v5 }
 0x920   : > { %2385 = vmatprep.subr.bf16.mxu0 %v2816_v52 }
 0x926   : > { %2366 = vmatmul.mubr.msk.bf16.vlgmr.msra.gmra.mxu0 %vm851_vm0, %v3183_v8 }
 0x927   : > { %2389 = vmatprep.mubr.msk.bf16.mxu0 %vm2818_vm1, %v2816_v52 }
 0x9d6   : > { %v3320_v62 = vpop.f32.mrf.mxu0 }
 0x9d8   : > { %v2359_v9 = vpop.f32.mrf.mxu0 }
 0x9da   : > { %v3322_v63 = vpop.f32.mrf.mxu0 }
 0x9dc   : > { %v2360_v0 = vpop.f32.mrf.mxu0 }
 0x9e6   : > { %v1439_v1 = vpop.f32.mrf.mxu0 }
 0x9e7   : > { %v1446_v2 = vsel %vm851_vm0, %v1439_v1, -inf }
 0x9e8   : > { %1447 = vmax.xlane.f32.xlu1 %v1446_v2  ;;  %v2367_v11 = vpop.f32.mrf.mxu0 }
 0x9ea   : > { %v1442_v3 = vpop.f32.mrf.mxu0 }
 0x9eb   : > { %v1449_v4 = vsel %vm851_vm0, %v1442_v3, -inf }
 0x9ec   : > { %1450 = vmax.xlane.f32.xlu0 %v1449_v4  ;;  %v2368_v7 = vpop.f32.mrf.mxu0 }
 0xa71   : > { %v1448_v10 = vpop.xlane.xlu1 %1447 }
 0xa72   : > { %v1452_v6 = vsub.f32 %v1439_v1, %v1448_v10 }
 0xa74   : > { %v1454_v14 = vmul.f32 1.442695, %v1452_v6 }
 0xa75   : > { %v1451_v15 = vpop.xlane.xlu0 %1450 }
 0xa76   : > { %2581 = vpow2.f32 %v1454_v14  ;;  %v1453_v16 = vsub.f32 %v1442_v3, %v1451_v15 }
 0xa78   : > { %v1456_v12 = vmul.f32 1.442695, %v1453_v16 }
 0xa7a   : > { %2583 = vpow2.f32 %v1456_v12 }
 0xa83   : > { %v2582_v17 = vpop.eup %2581 }
 0xa84   : > { %v1458_v18 = vsel %vm851_vm0, %v2582_v17, 0.0 }
 0xa85   : > { %1459 = vadd.xlane.f32.xlu1 %v1458_v18 }
 0xa87   : > { %v2584_v19 = vpop.eup %2583 }
 0xa88   : > { %v1461_v21 = vsel %vm851_vm0, %v2584_v19, 0.0 }
 0xa89   : > { %1462 = vadd.xlane.f32.xlu0 %v1461_v21 }
 0xa96   : > { %1522 = vrot.lane.b32.xlu1 %v3211_v28, %s2817_s4 }
 0xa9a   : > { %1516 = vrot.lane.b32.xlu1 %v3183_v8, %s2817_s4 }
 0xa9f   : > { %1520 = vrot.lane.b32.xlu0 %v3202_v20, %s2817_s4 }
 0xb0e   : > { %v1460_v25 = vpop.xlane.xlu1 %1459 }
 0xb0f   : > { %2585 = vrcp.f32 %v1460_v25 }
 0xb12   : > { %v1463_v26 = vpop.xlane.xlu0 %1462  ;;  %v1523_v33 = vpop.permute.xlu1 %1522 }
 0xb13   : > { %2587 = vrcp.f32 %v1463_v26  ;;  %v1531_v35 = vsel %vm851_vm0, %v1523_v33, 0 }
 0xb16   : > { %v1521_v36 = vpop.permute.xlu0 %1520  ;;  %v1517_v41 = vpop.permute.xlu1 %1516 }
 0xb17   : > { %v1528_v40 = vsel %vm851_vm0, %v1521_v36, 0 }
 0xb1c   : > { %v2586_v59 = vpop.eup %2585 }
 0xb1d   : > { %v1466_v29 = vmul.f32 %v2586_v59, %v2582_v17 }
 0xb20   : > { %v2588_v27 = vpop.eup %2587 }
 0xb21   : > { %v1467_v30 = vmul.f32 %v2588_v27, %v2584_v19 }
 0xb23   : > { %v1468_v34 = vpack.c.bf16 %v1467_v30, %v1466_v29 }
 0xb25   : > { %2374 = vmatmul.mubr.msk.bf16.vlgmr.msra.gmra.mxu1 %vm851_vm0, %v1468_v34 }
 0xb26   : > { %2378 = vmatpush3.bf16.xpose.msra.mxu1 %v1531_v35  ;;  %2381 = vmatprep.mubr.msk.bf16.mxu1 %vm2818_vm1, %v2816_v52 }
 0xb27   : > { %2379 = vmatprep.subr.bf16.mxu1 %v2816_v52 }
 0xb2e   : > { %2380 = vmatpush3.bf16.xpose.msra.mxu1 %v1528_v40 }
 0xb2f   : > { %2401 = vmatprep.subr.bf16.mxu1 %v2816_v52 }
 0xb35   : > { %2382 = vmatmul.mubr.msk.bf16.vlgmr.msra.gmra.mxu1 %vm851_vm0, %v1517_v41 }
 0xb36   : > { %2405 = vmatprep.mubr.msk.bf16.mxu1 %vm2818_vm1, %v2816_v52 }
 0xbe5   : > { %v1506_v42 = vpop.f32.mrf.mxu1 }
 0xbe6   : > { %1513 = vst.msk [vmem:[#allocation2 + $0x10] sm:$0xff] %vm851_vm0, %v1506_v42 }
 0xbe7   : > { %v2375_v38 = vpop.f32.mrf.mxu1 }
 0xbe9   : > { %v1509_v44 = vpop.f32.mrf.mxu1 }
 0xbea   : > { %1514 = vst.msk [vmem:[#allocation2 + $0x18] sm:$0xff] %vm851_vm0, %v1509_v44 }
 0xbeb   : > { %v2376_v39 = vpop.f32.mrf.mxu1 }
 0xbf5   : > { %v1567_v47 = vpop.f32.mrf.mxu1 }
 0xbf6   : > { %v1574_v48 = vsel %vm851_vm0, %v1567_v47, -inf }
 0xbf7   : > { %1575 = vmax.xlane.f32.xlu1 %v1574_v48  ;;  %v2383_v49 = vpop.f32.mrf.mxu1 }
 0xbf9   : > { %v1570_v50 = vpop.f32.mrf.mxu1 }
 0xbfa   : > { %v1577_v13 = vsel %vm851_vm0, %v1570_v50, -inf }
 0xbfb   : > { %1578 = vmax.xlane.f32.xlu0 %v1577_v13  ;;  %v2384_v51 = vpop.f32.mrf.mxu1 }
 0xc08   : > { %1599 = vrot.lane.b32.xlu1 %v3205_v23, %s2817_s4 }
 0xc80   : > { %v1576_v53 = vpop.xlane.xlu1 %1575 }
 0xc81   : > { %v1580_v54 = vsub.f32 %v1567_v47, %v1576_v53 }
 0xc83   : > { %v1582_v55 = vmul.f32 1.442695, %v1580_v54 }
 0xc84   : > { %v1579_v57 = vpop.xlane.xlu0 %1578  ;;  %v1600_v1 = vpop.permute.xlu1 %1599 }
 0xc85   : > { %2589 = vpow2.f32 %v1582_v55  ;;  %v1581_v58 = vsub.f32 %v1570_v50, %v1579_v57 }
 0xc87   : > { %v1584_v60 = vmul.f32 1.442695, %v1581_v58 }
 0xc89   : > { %2591 = vpow2.f32 %v1584_v60 }
 0xc92   : > { %v2590_v61 = vpop.eup %2589 }
 0xc93   : > { %v1586_v5 = vsel %vm851_vm0, %v2590_v61, 0.0 }
 0xc94   : > { %1587 = vadd.xlane.f32.xlu0 %v1586_v5 }
 0xc96   : > { %v2592_v9 = vpop.eup %2591 }
 0xc97   : > { %v1589_v0 = vsel %vm851_vm0, %v2592_v9, 0.0 }
 0xc98   : > { %1590 = vadd.xlane.f32.xlu1 %v1589_v0 }
 0xca9   : > { %1663 = vrot.lane.b32.xlu1 %v3211_v28, %s2819_s2 }
 0xcaa   : > { %1601 = vrot.lane.b32.xlu0 %v3284_v22, %s2817_s4 }
 0xcad   : > { %1661 = vrot.lane.b32.xlu1 %v3202_v20, %s2819_s2 }
 0xcae   : > { %1659 = vrot.lane.b32.xlu0 %v3183_v8, %s2819_s2 }
 0xd1d   : > { %v1588_v2 = vpop.xlane.xlu0 %1587 }
 0xd1e   : > { %2593 = vrcp.f32 %v1588_v2 }
 0xd21   : > { %v1591_v11 = vpop.xlane.xlu1 %1590  ;;  %v1602_v3 = vpop.permute.xlu0 %1601 }
 0xd22   : > { %2595 = vrcp.f32 %v1591_v11  ;;  %2386 = vmatpush3.bf16.msra.mxu0 %v1602_v3 }
 0xd23   : > { %2387 = vmatprep.subr.bf16.mxu0 %v2816_v52 }
 0xd25   : > { %v1664_v14 = vpop.permute.xlu1 %1663  ;;  %v1660_v18 = vpop.permute.xlu0 %1659 }
 0xd26   : > { %2388 = vmatpush3.bf16.msra.mxu0 %v1600_v1  ;;  %v1672_v16 = vsel %vm851_vm0, %v1664_v14, 0 }
 0xd27   : > { %2393 = vmatprep.subr.bf16.mxu0 %v2816_v52 }
 0xd29   : > { %v1662_v12 = vpop.permute.xlu1 %1661 }
 0xd2a   : > { %v1669_v17 = vsel %vm851_vm0, %v1662_v12, 0 }
 0xd2b   : > { %v2594_v4 = vpop.eup %2593 }
 0xd2c   : > { %v1594_v10 = vmul.f32 %v2594_v4, %v2590_v61 }
 0xd2f   : > { %v2596_v7 = vpop.eup %2595 }
 0xd30   : > { %v1595_v6 = vmul.f32 %v2596_v7, %v2592_v9 }
 0xd32   : > { %v1596_v15 = vpack.c.bf16 %v1595_v6, %v1594_v10 }
 0xd34   : > { %2390 = vmatmul.mubr.msk.bf16.vlgmr.msra.gmra.mxu0 %vm851_vm0, %v1596_v15 }
 0xd35   : > { %2394 = vmatpush3.bf16.xpose.msra.mxu0 %v1672_v16  ;;  %2397 = vmatprep.mubr.msk.bf16.mxu0 %vm2818_vm1, %v2816_v52 }
 0xd36   : > { %2395 = vmatprep.subr.bf16.mxu0 %v2816_v52 }
 0xd3d   : > { %2396 = vmatpush3.bf16.xpose.msra.mxu0 %v1669_v17 }
 0xd3e   : > { %2417 = vmatprep.subr.bf16.mxu0 %v2816_v52 }
 0xd44   : > { %2398 = vmatmul.mubr.msk.bf16.vlgmr.msra.gmra.mxu0 %vm851_vm0, %v1660_v18 }
 0xd45   : > { %2421 = vmatprep.mubr.msk.bf16.mxu0 %vm2818_vm1, %v2816_v52 }
 0xdf4   : > { %v3372_v19 = vpop.f32.mrf.mxu0 }
 0xdf6   : > { %v2391_v21 = vpop.f32.mrf.mxu0 }
 0xdf8   : > { %v3374_v25 = vpop.f32.mrf.mxu0 }
 0xdfa   : > { %v2392_v26 = vpop.f32.mrf.mxu0 }
 0xe04   : > { %v1708_v59 = vpop.f32.mrf.mxu0 }
 0xe05   : > { %v1715_v27 = vsel %vm851_vm0, %v1708_v59, -inf }
 0xe06   : > { %1716 = vmax.xlane.f32.xlu1 %v1715_v27  ;;  %v2399_v29 = vpop.f32.mrf.mxu0 }
 0xe08   : > { %v1711_v30 = vpop.f32.mrf.mxu0 }
 0xe09   : > { %v1718_v33 = vsel %vm851_vm0, %v1711_v30, -inf }
 0xe0a   : > { %1719 = vmax.xlane.f32.xlu0 %v1718_v33  ;;  %v2400_v34 = vpop.f32.mrf.mxu0 }
 0xe17   : > { %1740 = vrot.lane.b32.xlu1 %v3284_v22, %s2819_s2 }
 0xe1b   : > { %1802 = vrot.lane.b32.xlu1 %v3211_v28, %s2820_s26 }
 0xe1f   : > { %1800 = vrot.lane.b32.xlu1 %v3202_v20, %s2820_s26 }
 0xe23   : > { %1798 = vrot.lane.b32.xlu1 %v3183_v8, %s2820_s26 }
 0xe8f   : > { %v1717_v35 = vpop.xlane.xlu1 %1716 }
 0xe90   : > { %v1721_v36 = vsub.f32 %v1708_v59, %v1717_v35 }
 0xe92   : > { %v1723_v40 = vmul.f32 1.442695, %v1721_v36 }
 0xe93   : > { %v1741_v41 = vpop.permute.xlu1 %1740  ;;  %v1720_v42 = vpop.xlane.xlu0 %1719 }
 0xe94   : > { %2597 = vpow2.f32 %v1723_v40  ;;  %v1722_v38 = vsub.f32 %v1711_v30, %v1720_v42  ;;  %2402 = vmatpush3.bf16.msra.mxu1 %v1741_v41 }
 0xe95   : > { %2403 = vmatprep.subr.bf16.mxu1 %v2816_v52 }
 0xe96   : > { %v1725_v44 = vmul.f32 1.442695, %v1722_v38 }
 0xe97   : > { %v1803_v54 = vpop.permute.xlu1 %1802 }
 0xe98   : > { %2599 = vpow2.f32 %v1725_v44  ;;  %v1811_v57 = vsel %vm851_vm0, %v1803_v54, 0 }
 0xe9b   : > { %v1801_v58 = vpop.permute.xlu1 %1800 }
 0xe9c   : > { %v1808_v60 = vsel %vm851_vm0, %v1801_v58, 0 }
 0xe9f   : > { %v1799_v61 = vpop.permute.xlu1 %1798 }
 0xea1   : > { %v2598_v39 = vpop.eup %2597 }
 0xea2   : > { %v1727_v28 = vsel %vm851_vm0, %v2598_v39, 0.0 }
 0xea3   : > { %1728 = vadd.xlane.f32.xlu0 %v1727_v28 }
 0xea5   : > { %v2600_v20 = vpop.eup %2599 }
 0xea6   : > { %v1730_v47 = vsel %vm851_vm0, %v2600_v20, 0.0 }
 0xea7   : > { %1731 = vadd.xlane.f32.xlu0 %v1730_v47 }
 0xebd   : > { %1738 = vrot.lane.b32.xlu0 %v3205_v23, %s2819_s2 }
 0xf2c   : > { %v1729_v8 = vpop.xlane.xlu0 %1728 }
 0xf2d   : > { %2601 = vrcp.f32 %v1729_v8 }
 0xf30   : > { %v1732_v48 = vpop.xlane.xlu0 %1731 }
 0xf31   : > { %2603 = vrcp.f32 %v1732_v48 }
 0xf34   : > { %v1739_v49 = vpop.permute.xlu0 %1738 }
 0xf35   : > { %2404 = vmatpush3.bf16.msra.mxu1 %v1739_v49 }
 0xf36   : > { %2409 = vmatprep.subr.bf16.mxu1 %v2816_v52 }
 0xf3a   : > { %v2602_v50 = vpop.eup %2601 }
 0xf3b   : > { %v1735_v51 = vmul.f32 %v2602_v50, %v2598_v39 }
 0xf3e   : > { %v2604_v13 = vpop.eup %2603 }
 0xf3f   : > { %v1736_v53 = vmul.f32 %v2604_v13, %v2600_v20 }
 0xf41   : > { %v1737_v55 = vpack.c.bf16 %v1736_v53, %v1735_v51 }
 0xf43   : > { %2406 = vmatmul.mubr.msk.bf16.vlgmr.msra.gmra.mxu1 %vm851_vm0, %v1737_v55 }
 0xf44   : > { %2410 = vmatpush3.bf16.xpose.msra.mxu1 %v1811_v57  ;;  %2413 = vmatprep.mubr.msk.bf16.mxu1 %vm2818_vm1, %v2816_v52 }
 0xf45   : > { %2411 = vmatprep.subr.bf16.mxu1 %v2816_v52 }
 0xf4c   : > { %2412 = vmatpush3.bf16.xpose.msra.mxu1 %v1808_v60 }
 0xf53   : > { %2414 = vmatmul.mubr.msk.bf16.vlgmr.msra.gmra.mxu1 %vm851_vm0, %v1799_v61 }
0x1003   : > { %v1781_v5 = vpop.f32.mrf.mxu1 }
0x1005   : > { %v2407_v9 = vpop.f32.mrf.mxu1 }
0x1007   : > { %v1784_v0 = vpop.f32.mrf.mxu1 }
0x1009   : > { %v2408_v1 = vpop.f32.mrf.mxu1 }
0x1013   : > { %v1847_v2 = vpop.f32.mrf.mxu1 }
0x1014   : > { %v1854_v11 = vsel %vm851_vm0, %v1847_v2, -inf }
0x1015   : > { %1855 = vmax.xlane.f32.xlu0 %v1854_v11  ;;  %v2415_v3 = vpop.f32.mrf.mxu1 }
0x1017   : > { %v1850_v4 = vpop.f32.mrf.mxu1 }
0x1018   : > { %v1857_v7 = vsel %vm851_vm0, %v1850_v4, -inf }
0x1019   : > { %1858 = vmax.xlane.f32.xlu1 %v1857_v7  ;;  %v2416_v10 = vpop.f32.mrf.mxu1 }
0x102a   : > { %1877 = vrot.lane.b32.xlu1 %v3205_v23, %s2820_s26 }
0x102e   : > { %1107 = vrot.lane.b32.xlu1 %v3253_v45, %s2820_s26 }
0x1032   : > { %1109 = vrot.lane.b32.xlu1 %v3255_v46, %s2820_s26 }
0x1036   : > { %1653 = vrot.lane.b32.xlu1 %v3374_v25, %s2820_s26 }
0x103a   : > { %1249 = vrot.lane.b32.xlu1 %v3295_v56, %s2819_s2 }
0x103e   : > { %1792 = vrot.lane.b32.xlu1 %v1784_v0, %s2819_s2 }
0x1042   : > { %1389 = vrot.lane.b32.xlu1 %v3322_v63, %s2817_s4 }
0x109e   : > { %v1856_v6 = vpop.xlane.xlu0 %1855 }
0x109f   : > { %v1860_v14 = vsub.f32 %v1847_v2, %v1856_v6 }
0x10a1   : > { %v1862_v23 = vmul.f32 1.442695, %v1860_v14 }
0x10a2   : > { %v1859_v15 = vpop.xlane.xlu1 %1858 }
0x10a3   : > { %2605 = vpow2.f32 %v1862_v23  ;;  %v1861_v45 = vsub.f32 %v1850_v4, %v1859_v15  ;;  %v2205_v23 = vld [vmem:[%s3510_s8] ss:$0 sm:$0xff] }
0x10a5   : > { %v1864_v16 = vmul.f32 1.442695, %v1861_v45  ;;  %v2206_v45 = vld [vmem:[%s3511_s9] ss:$0 sm:$0xff] }
0x10a6   : > { %v1878_v12 = vpop.permute.xlu1 %1877 }
0x10a7   : > { %2607 = vpow2.f32 %v1864_v16 }
0x10aa   : > { %v1108_v46 = vpop.permute.xlu1 %1107 }
0x10ab   : > { %1114 = vst.msk [vmem:[#allocation2] sm:$0xff] %vm1113_vm2, %v1108_v46 }
0x10ae   : > { %v1110_v17 = vpop.permute.xlu1 %1109 }
0x10af   : > { %1115 = vst.msk [vmem:[#allocation2 + $0x8] sm:$0xff] %vm1113_vm2, %v1110_v17 }
0x10b0   : > { %v2606_v56 = vpop.eup %2605 }
0x10b1   : > { %v1866_v18 = vsel %vm851_vm0, %v2606_v56, 0.0 }
0x10b2   : > { %1867 = vadd.xlane.f32.xlu0 %v1866_v18  ;;  %v1654_v63 = vpop.permute.xlu1 %1653 }
0x10b3   : > { %1658 = vst.msk [vmem:[#allocation2 + $0x18] sm:$0xff] %vm1113_vm2, %v1654_v63 }
0x10b4   : > { %v2608_v21 = vpop.eup %2607 }
0x10b5   : > { %v1869_v25 = vsel %vm851_vm0, %v2608_v21, 0.0 }
0x10b6   : > { %1870 = vadd.xlane.f32.xlu0 %v1869_v25  ;;  %v1250_v26 = vpop.permute.xlu1 %1249 }
0x10b7   : > { %1255 = vst.msk [vmem:[#allocation2 + $0x8] sm:$0xff] %vm1253_vm3, %v1250_v26 }
0x10ba   : > { %v1793_v59 = vpop.permute.xlu1 %1792 }
0x10bb   : > { %1797 = vst.msk [vmem:[#allocation2 + $0x18] sm:$0xff] %vm1253_vm3, %v1793_v59 }
0x10be   : > { %v1390_v27 = vpop.permute.xlu1 %1389 }
0x10bf   : > { %1395 = vst.msk [vmem:[#allocation2 + $0x8] sm:$0xff] %vm1393_vm4, %v1390_v27 }
0x10c6   : > { %v1938_v20 = vld [vmem:[#allocation2 + $0x8] sm:$0xff] }
0x10c7   : > { %v1942_v47 = vadd.f32 %v1938_v20, %v3147_v31 }
0x10cc   : > { %1879 = vrot.lane.b32.xlu0 %v3284_v22, %s2820_s26 }
0x10d0   : > { %1651 = vrot.lane.b32.xlu0 %v3372_v19, %s2820_s26 }
0x10d4   : > { %1247 = vrot.lane.b32.xlu0 %v3293_v24, %s2819_s2 }
0x10d8   : > { %1790 = vrot.lane.b32.xlu0 %v1781_v5, %s2819_s2 }
0x10dc   : > { %1387 = vrot.lane.b32.xlu0 %v3320_v62, %s2817_s4 }
0x113b   : > { %v1868_v29 = vpop.xlane.xlu0 %1867 }
0x113c   : > { %2609 = vrcp.f32 %v1868_v29 }
0x113f   : > { %v1871_v30 = vpop.xlane.xlu0 %1870 }
0x1140   : > { %2611 = vrcp.f32 %v1871_v30 }
0x1143   : > { %v1880_v33 = vpop.permute.xlu0 %1879 }
0x1144   : > { %2418 = vmatpush3.bf16.msra.mxu0 %v1880_v33 }
0x1145   : > { %2419 = vmatprep.subr.bf16.mxu0 %v2816_v52 }
0x1147   : > { %v1652_v22 = vpop.permute.xlu0 %1651 }
0x1148   : > { %1657 = vst.msk [vmem:[#allocation2 + $0x10] sm:$0xff] %vm1113_vm2, %v1652_v22  ;;  %2420 = vmatpush3.bf16.msra.mxu0 %v1878_v12 }
0x1149   : > { %v2610_v19 = vpop.eup %2609 }
0x114a   : > { %v1874_v35 = vmul.f32 %v2610_v19, %v2606_v56 }
0x114b   : > { %v1248_v34 = vpop.permute.xlu0 %1247 }
0x114c   : > { %1254 = vst.msk [vmem:[#allocation2] sm:$0xff] %vm1253_vm3, %v1248_v34 }
0x114d   : > { %v2612_v24 = vpop.eup %2611 }
0x114e   : > { %v1875_v36 = vmul.f32 %v2612_v24, %v2608_v21 }
0x114f   : > { %v1791_v62 = vpop.permute.xlu0 %1790 }
0x1150   : > { %1796 = vst.msk [vmem:[#allocation2 + $0x10] sm:$0xff] %vm1253_vm3, %v1791_v62  ;;  %v1876_v40 = vpack.c.bf16 %v1875_v36, %v1874_v35 }
0x1152   : > { %2422 = vmatmul.mubr.msk.bf16.vlgmr.msra.gmra.mxu0 %vm851_vm0, %v1876_v40 }
0x1153   : > { %v1388_v41 = vpop.permute.xlu0 %1387 }
0x1154   : > { %1394 = vst.msk [vmem:[#allocation2] sm:$0xff] %vm1393_vm4, %v1388_v41 }
0x115b   : > { %v1937_v39 = vld [vmem:[#allocation2] sm:$0xff] }
0x115c   : > { %v1941_v28 = vadd.f32 %v1937_v39, %v3145_v37 }
0x1212   : > { %v1920_v52 = vpop.f32.mrf.mxu0 }
0x1213   : > { %1929 = vrot.lane.b32.xlu0 %v1920_v52, %s2817_s4 }
0x1214   : > { %v2423_v42 = vpop.f32.mrf.mxu0 }
0x1216   : > { %v1923_v38 = vpop.f32.mrf.mxu0 }
0x1217   : > { %1931 = vrot.lane.b32.xlu1 %v1923_v38, %s2817_s4  ;;  %s3457_s4 = scalar_lea.hbm %s3512_s10, %s2218_s12 }
0x1218   : > { %v2424_v44 = vpop.f32.mrf.mxu0 }
0x1232   : > { %1945 = vadd.xlane.f32.xlu0 %v1941_v28 }
0x123b   : > { %1947 = vadd.xlane.f32.xlu1 %v1942_v47 }
0x1285   : > { %v1930_v8 = vpop.permute.xlu0 %1929 }
0x1286   : > { %1935 = vst.msk [vmem:[#allocation2 + $0x10] sm:$0xff] %vm1393_vm4, %v1930_v8 }
0x1289   : > { %v1932_v48 = vpop.permute.xlu1 %1931 }
0x128a   : > { %1936 = vst.msk [vmem:[#allocation2 + $0x18] sm:$0xff] %vm1393_vm4, %v1932_v48 }
0x128d   : > { %v1939_v49 = vld [vmem:[#allocation2 + $0x10] sm:$0xff] }
0x128e   : > { %v1943_v50 = vadd.f32 %v1939_v49, %v3152_v43 }
0x1290   : > { %1949 = vadd.xlane.f32.xlu0 %v1943_v50 }
0x1291   : > { %v1940_v13 = vld [vmem:[#allocation2 + $0x18] sm:$0xff] }
0x1292   : > { %v1944_v51 = vadd.f32 %v1940_v13, %v3154_v32 }
0x1294   : > { %1951 = vadd.xlane.f32.xlu0 %v1944_v51 }
0x12bb   : > { %v1946_v37 = vpop.xlane.xlu0 %1945 }
0x12bc   : > { %v1953_v53 = vmul.f32 0.0078125, %v1946_v37 }
0x12be   : > { %v1957_v54 = vsub.f32 %v1941_v28, %v1953_v53 }
0x12c0   : > { %v1961_v55 = vmul.f32 %v1957_v54, %v1957_v54 }
0x12c2   : > { %1965 = vadd.xlane.f32.xlu0 %v1961_v55 }
0x12c4   : > { %v1948_v31 = vpop.xlane.xlu1 %1947 }
0x12c5   : > { %v1954_v57 = vmul.f32 0.0078125, %v1948_v31 }
0x12c7   : > { %v1958_v58 = vsub.f32 %v1942_v47, %v1954_v57 }
0x12c9   : > { %v1962_v60 = vmul.f32 %v1958_v58, %v1958_v58 }
0x12cb   : > { %1967 = vadd.xlane.f32.xlu1 %v1962_v60 }
0x1319   : > { %v1950_v61 = vpop.xlane.xlu0 %1949 }
0x131a   : > { %v1955_v5 = vmul.f32 0.0078125, %v1950_v61 }
0x131c   : > { %v1959_v9 = vsub.f32 %v1943_v50, %v1955_v5 }
0x131d   : > { %v1952_v0 = vpop.xlane.xlu0 %1951 }
0x131e   : > { %v1956_v43 = vmul.f32 0.0078125, %v1952_v0  ;;  %v1963_v1 = vmul.f32 %v1959_v9, %v1959_v9 }
0x1320   : > { %v1960_v2 = vsub.f32 %v1944_v51, %v1956_v43  ;;  %1969 = vadd.xlane.f32.xlu0 %v1963_v1 }
0x1322   : > { %v1964_v32 = vmul.f32 %v1960_v2, %v1960_v2 }
0x1324   : > { %1971 = vadd.xlane.f32.xlu1 %v1964_v32 }
0x134b   : > { %v1966_v11 = vpop.xlane.xlu0 %1965 }
0x134c   : > { %v1973_v3 = vmul.f32 0.0078125, %v1966_v11 }
0x134e   : > { %v1977_v4 = vadd.f32 1e-05, %v1973_v3 }
0x1350   : > { %2613 = vrsqrt.f32 %v1977_v4 }
0x1354   : > { %v1968_v7 = vpop.xlane.xlu1 %1967 }
0x1355   : > { %v1974_v10 = vmul.f32 0.0078125, %v1968_v7 }
0x1357   : > { %v1978_v6 = vadd.f32 1e-05, %v1974_v10 }
0x1359   : > { %2615 = vrsqrt.f32 %v1978_v6 }
0x135d   : > { %v2614_v14 = vpop.eup %2613 }
0x135e   : > { %v1985_v15 = vmul.f32 %v2614_v14, %v1957_v54 }
0x1360   : > { %v1995_v16 = vmul.f32 %v2205_v23, %v1985_v15 }
0x1362   : > { %v2005_v12 = vadd.f32 %v2206_v45, %v1995_v16 }
0x1364   : > { %2009 = vst [vmem:[%s448_s21] sm:$0xff] %v2005_v12 }
0x1366   : > { %v2616_v46 = vpop.eup %2615 }
0x1367   : > { %v1986_v17 = vmul.f32 %v2616_v46, %v1958_v58 }
0x1369   : > { %v1996_v56 = vmul.f32 %v2205_v23, %v1986_v17 }
0x136b   : > { %v2006_v18 = vadd.f32 %v2206_v45, %v1996_v56 }
0x136d   : > { %2010 = vst [vmem:[%s448_s21 + $0x8] sm:$0xff] %v2006_v18 }
0x13a9   : > { %v1970_v63 = vpop.xlane.xlu0 %1969 }
0x13aa   : > { %v1975_v21 = vmul.f32 0.0078125, %v1970_v63 }
0x13ac   : > { %v1979_v25 = vadd.f32 1e-05, %v1975_v21 }
0x13ad   : > { %v1972_v26 = vpop.xlane.xlu1 %1971 }
0x13ae   : > { %2617 = vrsqrt.f32 %v1979_v25  ;;  %v1976_v59 = vmul.f32 0.0078125, %v1972_v26 }
0x13b0   : > { %v1980_v27 = vadd.f32 1e-05, %v1976_v59 }
0x13b2   : > { %2619 = vrsqrt.f32 %v1980_v27 }
0x13bb   : > { %v2618_v29 = vpop.eup %2617 }
0x13bc   : > { %v1987_v30 = vmul.f32 %v2618_v29, %v1959_v9 }
0x13be   : > { %v1997_v33 = vmul.f32 %v2205_v23, %v1987_v30 }
0x13bf   : > { %v2620_v22 = vpop.eup %2619 }
0x13c0   : > { %v2007_v19 = vadd.f32 %v2206_v45, %v1997_v33  ;;  %v1988_v34 = vmul.f32 %v2620_v22, %v1960_v2 }
0x13c2   : > { %2011 = vst [vmem:[%s448_s21 + $0x10] sm:$0xff] %v2007_v19  ;;  %v1998_v24 = vmul.f32 %v2205_v23, %v1988_v34 }
0x13c4   : > { %v2008_v35 = vadd.f32 %v2206_v45, %v1998_v24 }
0x13c6   : > { %2012 = vst [vmem:[%s448_s21 + $0x18] sm:$0xff] %v2008_v35 }
0x13c7   : > { %2742 = shalt.err (!%p2739_p7)
}
0x13c8   : > { %s2743_s27 = scalar_lea.hbm %s3457_s4, 512  ;;  %s2747_s26 = scalar_lea.hbm %s3512_s10, 1024 }
0x13c9   : > { %p2744_p2 = scmp.ne.s32.totalorder %s3457_s4, %s2743_s27  ;;  %p2748_p11 = scmp.lt.s32.totalorder %s3457_s4, %s3512_s10 }
0x13ca   : > { %p2749_p10 = scmp.lt.s32.totalorder %s2747_s26, %s2743_s27 }
0x13cb   : > { %p2745_p0 = pnand %p2744_p2, %p3552_p3 }
0x13cc   : > { %p2750_p6 = por %p2749_p10, %p2748_p11 }
0x13cd   : > { %p2746_p8 = pneg %p2745_p0 }
0x13cf   : > { %p2751_p12 = pnand %p2750_p6, %p2746_p8 }
0x13d1   : > { %2754 = shalt.err (!%p2751_p12)
}
0x13d2   : > { %s2822_s0 = smov 128   ;;  %s2823_s20 = smov 8  }
0x13d3   : > { %2437 = dma.vmem_to_hbm [thread:$0]  (%p3552_p3), %s3459_s15, 512, %s3457_s4, %s2014_s30, %s2822_s0, %s2822_s0, %s2823_s20  }
0x13d4 PF: > { %s3553_s21 = sld [smem:[#allocation17_spill]]  ;;  %p3556_p13 = scmp.ge.s32.totalorder %s2805_s16, 2 }
0x13d5   : > { %s3554_s12 = sld [smem:[#allocation19_spill]] }
0x13da   : > { %s2043_s19 = sand.u32 1, %s3553_s21  }
0x13db   : > { %p3555_p9 = scmp.ne.s32.totalorder %s3554_s12, 0  ;;  %s2044_s23 = scalar_lea.sflag [#allocation5], %s2043_s19 }
0x13dd   : > { %p2454_p5 = pnand %p3556_p13, %p3555_p9 }
0x13df   : > { %p2455_p1 = pneg %p2454_p5 }
0x13e1   : > { %2788 = dma.done.wait (%p2455_p1), %s2044_s23, 512  }
0x13e2   : > { %2790 = vsyncadd (%p2455_p1), %s2044_s23, 4294966784  ;;  %s3557_s16 = sld [smem:[#allocation20_spill]]  ;;  %s3560_s13 = smov %s2797_s14 }
0x13e3   : > { %s3558_s28 = sld [smem:[#allocation18_spill]] }
0x13e4   : > { %s3559_s15 = sld [smem:[#allocation21_spill]] }
0x13e8   : > { %p27_p4 = scmp.ge.s32.totalorder %s3557_s16, 4  }
0x13e9   : > { %s3561_s14 = smov %s3558_s28 }
0x13ea   :  { %29 = sbr.rel (!%p27_p4) target bundleno = 12 (0xc), region = 126 }
0x13ef   :  { %2049 = vsyncpa [#allocation4], 1 }
0x13f0   :  { %2051 = vsyncpa [#allocation4 + $0x1], 1 }
0x13f1   :  { %2052 = vsyncpa [#allocation7], 1 }
0x13f2   :  { %2054 = vsyncpa [#allocation7 + $0x1], 1 }
0x13f3   :  { %2055 = vsyncpa [#allocation10], 1 }
0x13f4   :  { %2056 = vsyncpa [#allocation5], 1 }
0x13f5   :  { %2058 = vsyncpa [#allocation5 + $0x1], 1 }

</bundles_post_ra>
